<compile_context>
chip_gen: v5e
topology: v5e:2x2
jax: 0.10.0
libtpu: 0.0.40
codegen_flags: <defaults>
</compile_context>

<pallas_src>
import functools

import jax
import jax.numpy as jnp
import numpy as np
from jax.experimental import pallas as pl
from jax.experimental.pallas import tpu as pltpu

HIDDEN_SIZE = 32


# ----------------------- fused multi-encoder kernel --------------------------
def _encode_batched(ops, n_pre, n_mlp, rows, npts):
    """One PointNetPolylineEncoder, fully batched (one matmul per layer).

    ops layout: x (R*N, C), m (R*N, 1), valid (R, 1),
                [w, b] * n_pre,
                w_agg_point, w_agg_pool, b_agg,
                [w, b] * (n_mlp - 1),
                w1, b1, w2, b2 (output MLP).
    Weights bf16, activations / biases f32.
    Returns y: (R, out_channels) f32.
    """
    pos = 0
    x = ops[pos][...]          # (R*N, C) f32
    m = ops[pos + 1][...]      # (R*N, 1) f32
    valid = ops[pos + 2][...]  # (R, 1)   f32
    pos += 3

    def dense(v, w_ref, b_ref, relu=True):
        acc = jnp.dot(v.astype(jnp.bfloat16), w_ref[...],
                      preferred_element_type=jnp.float32) + b_ref[...]
        return jnp.maximum(acc, 0.0) if relu else acc

    # pre MLP (BN folded), batched over all R*N points
    for _ in range(n_pre):
        x = dense(x, ops[pos], ops[pos + 1])
        pos += 2
    x = x * m                                         # zero invalid points
    H = x.shape[-1]
    pooled = jnp.max(x.reshape(rows, npts, H), axis=1)            # (R, H)

    # aggregation layer == concat([x, pooled]) @ W, done as a split sum
    w_pt, w_pool, b0 = ops[pos], ops[pos + 1], ops[pos + 2]
    pos += 3
    pool_term = (jnp.dot(pooled.astype(jnp.bfloat16), w_pool[...],
                         preferred_element_type=jnp.float32) + b0[...])  # (R, H2)
    pt = jnp.dot(x.astype(jnp.bfloat16), w_pt[...],
                 preferred_element_type=jnp.float32)                     # (R*N, H2)
    H2 = pt.shape[-1]
    acc = pt.reshape(rows, npts, H2) + pool_term.reshape(rows, 1, H2)
    x = jnp.maximum(acc, 0.0).reshape(rows * npts, H2)

    # remaining MLP layers (BN folded)
    for _ in range(n_mlp - 1):
        x = dense(x, ops[pos], ops[pos + 1])
        pos += 2
    x = x * m
    feat = jnp.max(x.reshape(rows, npts, x.shape[-1]), axis=1)           # (R, H)

    # output MLP on the pooled matrix: two matmuls total
    y = dense(feat, ops[pos], ops[pos + 1])
    pos += 2
    y = dense(y, ops[pos], ops[pos + 1], relu=False)                     # (R, out)
    return y * valid                                   # zero all-invalid polylines


def _multimodal_kernel(*refs, enc_specs, batch, ent_total):
    """Fused forward of all three encoders.

    refs = per-encoder operand lists (see _encode_batched) back-to-back,
           followed by the output ref of shape (batch * ent_total, out_ch)
           laid out in the final concat order (per batch: actor | map | tl).
    """
    o_ref = refs[-1]
    pos = 0
    ent_off = 0
    for (n_pre, n_mlp, rows, npts, n_ops) in enc_specs:
        ops = refs[pos:pos + n_ops]
        pos += n_ops
        y = _encode_batched(ops, n_pre, n_mlp, rows, npts)   # (rows, out_ch)
        n_ent = rows // batch
        for b in range(batch):  # static, tiny: one slab store per (encoder, batch)
            o_ref[pl.ds(b * ent_total + ent_off, n_ent), :] = \
                y[b * n_ent:(b + 1) * n_ent, :]
        ent_off += n_ent


# --------------------------------- wrappers ----------------------------------
def _fold_bn(w, bn, eps=1e-5):
    """Fold eval-mode BatchNorm1d into the preceding bias-free Linear (exact)."""
    scale = bn["gamma"] / jnp.sqrt(bn["var"] + eps)
    return w * scale[None, :], bn["beta"] - bn["mean"] * scale


def _encoder_operands(p, feats, mask):
    """Flatten one encoder's inputs + weights into the kernel operand list."""
    B, P, N, C = feats.shape
    valid = jnp.any(mask, axis=2).reshape(B * P, 1).astype(jnp.float32)
    # pad the point axis to a multiple of 8 (zero features, zero mask) so the
    # in-kernel (R*N,H)<->(R,N,H) reshapes are layout-free major-dim merges
    n_pad = (-N) % 8
    if n_pad:
        feats = jnp.pad(feats, ((0, 0), (0, 0), (0, n_pad), (0, 0)))
        mask = jnp.pad(mask, ((0, 0), (0, 0), (0, n_pad)))
    Np = N + n_pad
    R = B * P
    x = feats.reshape(R * Np, C).astype(jnp.float32)
    m = mask.reshape(R * Np, 1).astype(jnp.float32)

    ops = [x, m, valid]
    for layer in p["pre"]:
        w, b = _fold_bn(layer["w"], layer["bn"])
        ops += [w.astype(jnp.bfloat16), b.reshape(1, -1).astype(jnp.float32)]
    # first aggregation layer: split its (2H, H) weight into point / pooled halves
    w0, b0 = _fold_bn(p["mlp"][0]["w"], p["mlp"][0]["bn"])
    hid = w0.shape[1]
    ops += [w0[:hid].astype(jnp.bfloat16), w0[hid:].astype(jnp.bfloat16),
            b0.reshape(1, -1).astype(jnp.float32)]
    for layer in p["mlp"][1:]:
        w, b = _fold_bn(layer["w"], layer["bn"])
        ops += [w.astype(jnp.bfloat16), b.reshape(1, -1).astype(jnp.float32)]
    for layer in p["out"]:
        ops += [layer["w"].astype(jnp.bfloat16),
                layer["b"].reshape(1, -1).astype(jnp.float32)]
    spec = (len(p["pre"]), len(p["mlp"]), R, Np, len(ops))
    return ops, spec


@jax.jit
def multimodal_encoder_forward(params,
                               history_features, history_availabilities,
                               roadgraph_features, roadgraph_availabilities,
                               tl_features, tl_availabilities):
    encoders = [
        (params["actor_encoder"], history_features, history_availabilities),
        (params["map_encoder"], roadgraph_features, roadgraph_availabilities),
        (params["tl_encoder"], tl_features, tl_availabilities),
    ]
    B = history_features.shape[0]
    operands, specs, ent_counts = [], [], []
    for p, feats, mask in encoders:
        ops, spec = _encoder_operands(p, feats, mask)
        operands += ops
        specs.append(spec)
        ent_counts.append(feats.shape[1])
    ent_total = sum(ent_counts)
    out_ch = params["actor_encoder"]["out"][-1]["w"].shape[-1]

    flat = pl.pallas_call(
        functools.partial(_multimodal_kernel, enc_specs=tuple(specs),
                          batch=B, ent_total=ent_total),
        out_shape=jax.ShapeDtypeStruct((B * ent_total, out_ch), jnp.float32),
        in_specs=[pl.BlockSpec(memory_space=pltpu.MemorySpace.VMEM)] * len(operands),
        out_specs=pl.BlockSpec(memory_space=pltpu.MemorySpace.VMEM),
    )(*operands)
    global_features = flat.reshape(B, ent_total, out_ch)

    global_avails = jnp.concatenate(
        [jnp.any(history_availabilities, axis=2),
         jnp.any(roadgraph_availabilities, axis=2),
         jnp.any(tl_availabilities, axis=2)], axis=1)
    return global_features, global_avails


# ------------------------- pure-JAX reference (f32) --------------------------
def _pointnet_reference(p, feats, mask):
    m = mask.astype(jnp.float32)[..., None]
    x = feats.astype(jnp.float32)
    for layer in p["pre"]:
        w, b = _fold_bn(layer["w"], layer["bn"])
        x = jax.nn.relu(x @ w + b)
    x = x * m
    pooled = jnp.max(x, axis=2, keepdims=True)
    x = jnp.concatenate([x, jnp.broadcast_to(pooled, x.shape)], axis=-1)
    for layer in p["mlp"]:
        w, b = _fold_bn(layer["w"], layer["bn"])
        x = jax.nn.relu(x @ w + b)
    x = x * m
    feat = jnp.max(x, axis=2)
    y = jax.nn.relu(feat @ p["out"][0]["w"] + p["out"][0]["b"])
    y = y @ p["out"][1]["w"] + p["out"][1]["b"]
    valid = jnp.any(mask, axis=2)
    return jnp.where(valid[..., None], y, 0.0)


def multimodal_encoder_reference(params, hf, ha, rf, ra, tf, ta):
    gf = jnp.concatenate([_pointnet_reference(params["actor_encoder"], hf, ha),
                          _pointnet_reference(params["map_encoder"], rf, ra),
                          _pointnet_reference(params["tl_encoder"], tf, ta)], axis=1)
    ga = jnp.concatenate([jnp.any(ha, axis=2), jnp.any(ra, axis=2),
                          jnp.any(ta, axis=2)], axis=1)
    return gf, ga


# ------------------------------ parameter init -------------------------------
def init_pointnet(keys, c_in, hidden, out_channels, num_layers, num_pre_layers):
    def lin(kin, kout, bias, scale=0.1):
        d = {"w": jax.random.normal(next(keys), (kin, kout), jnp.float32) * scale}
        if bias:
            d["b"] = jax.random.normal(next(keys), (kout,), jnp.float32) * scale
        return d

    def bn(n):
        return {"gamma": 1.0 + 0.2 * jax.random.normal(next(keys), (n,), jnp.float32),
                "beta": 0.1 * jax.random.normal(next(keys), (n,), jnp.float32),
                "mean": 0.1 * jax.random.normal(next(keys), (n,), jnp.float32),
                "var": jax.random.uniform(next(keys), (n,), jnp.float32, 0.5, 1.5)}

    pre, cin = [], c_in
    for _ in range(num_pre_layers):
        layer = lin(cin, hidden, bias=False)
        layer["bn"] = bn(hidden)
        pre.append(layer)
        cin = hidden
    mlp, cin = [], hidden * 2
    for _ in range(num_layers - num_pre_layers):
        layer = lin(cin, hidden, bias=False)
        layer["bn"] = bn(hidden)
        mlp.append(layer)
        cin = hidden
    out = [lin(hidden, hidden, bias=True), lin(hidden, out_channels, bias=True)]
    return {"pre": pre, "mlp": mlp, "out": out}


# ------------------------------------ main ------------------------------------
if __name__ == "__main__":
    key = jax.random.PRNGKey(0)
    kparam, k1, k2, k3, k4, k5, k6 = jax.random.split(key, 7)
    keys = iter(jax.random.split(kparam, 512))

    B = 2
    A, P_HIST, ACTOR_C = 4, 8, 13       # actors, history steps, actor_input_size
    N_POLY, N_PTS, MAP_C = 6, 8, 24     # map polylines, points, map_input_size
    N_TL, T_TL, TL_C = 3, 4, 12         # traffic lights, timesteps, tl_input_size

    params = {
        "actor_encoder": init_pointnet(keys, ACTOR_C, HIDDEN_SIZE // 2, HIDDEN_SIZE,
                                       num_layers=5, num_pre_layers=3),
        "map_encoder": init_pointnet(keys, MAP_C, HIDDEN_SIZE // 2, HIDDEN_SIZE,
                                     num_layers=3, num_pre_layers=1),
        "tl_encoder": init_pointnet(keys, TL_C, HIDDEN_SIZE // 2, HIDDEN_SIZE,
                                    num_layers=3, num_pre_layers=1),
    }

    history_features = jax.random.normal(k1, (B, A, P_HIST, ACTOR_C), jnp.float32)
    history_availabilities = jax.random.bernoulli(k2, 0.8, (B, A, P_HIST))
    roadgraph_features = jax.random.normal(k3, (B, N_POLY, N_PTS, MAP_C), jnp.float32)
    roadgraph_availabilities = jax.random.bernoulli(k4, 0.7, (B, N_POLY, N_PTS))
    tl_features = jax.random.normal(k5, (B, N_TL, T_TL, TL_C), jnp.float32)
    tl_availabilities = jax.random.bernoulli(k6, 0.9, (B, N_TL, T_TL))

    global_features, global_avails = multimodal_encoder_forward(
        params, history_features, history_availabilities,
        roadgraph_features, roadgraph_availabilities,
        tl_features, tl_availabilities)
    global_features, global_avails = jax.block_until_ready(
        (global_features, global_avails))

    n_entities = A + N_POLY + N_TL
    assert global_features.shape == (B, n_entities, HIDDEN_SIZE), global_features.shape
    assert global_avails.shape == (B, n_entities), global_avails.shape
    assert bool(jnp.all(jnp.isfinite(global_features)))

    ref_f, ref_a = multimodal_encoder_reference(
        params, history_features, history_availabilities,
        roadgraph_features, roadgraph_availabilities,
        tl_features, tl_availabilities)
    np.testing.assert_array_equal(np.asarray(global_avails), np.asarray(ref_a))
    np.testing.assert_allclose(np.asarray(global_features), np.asarray(ref_f),
                               rtol=5e-2, atol=5e-2)

    print("KERNEL_OK")
</pallas_src>

<mosaic_0001>
module attributes {stable_mosaic.version = 11 : i64} {
  func.func @_multimodal_kernel(%arg0: memref<64x13xf32, #tpu.memory_space<vmem>>, %arg1: memref<64x1xf32, #tpu.memory_space<vmem>>, %arg2: memref<8x1xf32, #tpu.memory_space<vmem>>, %arg3: memref<13x16xbf16, #tpu.memory_space<vmem>>, %arg4: memref<1x16xf32, #tpu.memory_space<vmem>>, %arg5: memref<16x16xbf16, #tpu.memory_space<vmem>>, %arg6: memref<1x16xf32, #tpu.memory_space<vmem>>, %arg7: memref<16x16xbf16, #tpu.memory_space<vmem>>, %arg8: memref<1x16xf32, #tpu.memory_space<vmem>>, %arg9: memref<16x16xbf16, #tpu.memory_space<vmem>>, %arg10: memref<16x16xbf16, #tpu.memory_space<vmem>>, %arg11: memref<1x16xf32, #tpu.memory_space<vmem>>, %arg12: memref<16x16xbf16, #tpu.memory_space<vmem>>, %arg13: memref<1x16xf32, #tpu.memory_space<vmem>>, %arg14: memref<16x16xbf16, #tpu.memory_space<vmem>>, %arg15: memref<1x16xf32, #tpu.memory_space<vmem>>, %arg16: memref<16x32xbf16, #tpu.memory_space<vmem>>, %arg17: memref<1x32xf32, #tpu.memory_space<vmem>>, %arg18: memref<96x24xf32, #tpu.memory_space<vmem>>, %arg19: memref<96x1xf32, #tpu.memory_space<vmem>>, %arg20: memref<12x1xf32, #tpu.memory_space<vmem>>, %arg21: memref<24x16xbf16, #tpu.memory_space<vmem>>, %arg22: memref<1x16xf32, #tpu.memory_space<vmem>>, %arg23: memref<16x16xbf16, #tpu.memory_space<vmem>>, %arg24: memref<16x16xbf16, #tpu.memory_space<vmem>>, %arg25: memref<1x16xf32, #tpu.memory_space<vmem>>, %arg26: memref<16x16xbf16, #tpu.memory_space<vmem>>, %arg27: memref<1x16xf32, #tpu.memory_space<vmem>>, %arg28: memref<16x16xbf16, #tpu.memory_space<vmem>>, %arg29: memref<1x16xf32, #tpu.memory_space<vmem>>, %arg30: memref<16x32xbf16, #tpu.memory_space<vmem>>, %arg31: memref<1x32xf32, #tpu.memory_space<vmem>>, %arg32: memref<48x12xf32, #tpu.memory_space<vmem>>, %arg33: memref<48x1xf32, #tpu.memory_space<vmem>>, %arg34: memref<6x1xf32, #tpu.memory_space<vmem>>, %arg35: memref<12x16xbf16, #tpu.memory_space<vmem>>, %arg36: memref<1x16xf32, #tpu.memory_space<vmem>>, %arg37: memref<16x16xbf16, #tpu.memory_space<vmem>>, %arg38: memref<16x16xbf16, #tpu.memory_space<vmem>>, %arg39: memref<1x16xf32, #tpu.memory_space<vmem>>, %arg40: memref<16x16xbf16, #tpu.memory_space<vmem>>, %arg41: memref<1x16xf32, #tpu.memory_space<vmem>>, %arg42: memref<16x16xbf16, #tpu.memory_space<vmem>>, %arg43: memref<1x16xf32, #tpu.memory_space<vmem>>, %arg44: memref<16x32xbf16, #tpu.memory_space<vmem>>, %arg45: memref<1x32xf32, #tpu.memory_space<vmem>>, %arg46: memref<26x32xf32, #tpu.memory_space<vmem>>) attributes {dimension_semantics = [], scalar_prefetch = 0 : i64, scratch_operands = 0 : i64, tpu.core_type = #tpu.core_type<tc>} {
    %c0 = arith.constant 0 : index
    %c0_0 = arith.constant 0 : index
    %0 = vector.load %arg0[%c0, %c0_0] : memref<64x13xf32, #tpu.memory_space<vmem>>, vector<64x13xf32>
    %c0_1 = arith.constant 0 : index
    %c0_2 = arith.constant 0 : index
    %1 = vector.load %arg1[%c0_1, %c0_2] : memref<64x1xf32, #tpu.memory_space<vmem>>, vector<64x1xf32>
    %c0_3 = arith.constant 0 : index
    %c0_4 = arith.constant 0 : index
    %2 = vector.load %arg2[%c0_3, %c0_4] : memref<8x1xf32, #tpu.memory_space<vmem>>, vector<8x1xf32>
    %3 = arith.truncf %0 : vector<64x13xf32> to vector<64x13xbf16>
    %c0_5 = arith.constant 0 : index
    %c0_6 = arith.constant 0 : index
    %4 = vector.load %arg3[%c0_5, %c0_6] : memref<13x16xbf16, #tpu.memory_space<vmem>>, vector<13x16xbf16>
    %cst = arith.constant dense<0.000000e+00> : vector<64x16xf32>
    %5 = tpu.matmul %3, %4, %cst {dimension_numbers = #tpu.dot_dimension_numbers<[1], [0], [0], [1], [0, 0, 1, 1], [], []>} : vector<64x13xbf16>, vector<13x16xbf16>, vector<64x16xf32> -> vector<64x16xf32>
    %c0_7 = arith.constant 0 : index
    %c0_8 = arith.constant 0 : index
    %6 = vector.load %arg4[%c0_7, %c0_8] : memref<1x16xf32, #tpu.memory_space<vmem>>, vector<1x16xf32>
    %7 = vector.broadcast %6 : vector<1x16xf32> to vector<64x16xf32>
    %8 = arith.addf %5, %7 : vector<64x16xf32>
    %cst_9 = arith.constant 0.000000e+00 : f32
    %9 = vector.broadcast %cst_9 : f32 to vector<64x16xf32>
    %10 = arith.maximumf %8, %9 : vector<64x16xf32>
    %11 = arith.truncf %10 : vector<64x16xf32> to vector<64x16xbf16>
    %c0_10 = arith.constant 0 : index
    %c0_11 = arith.constant 0 : index
    %12 = vector.load %arg5[%c0_10, %c0_11] : memref<16x16xbf16, #tpu.memory_space<vmem>>, vector<16x16xbf16>
    %cst_12 = arith.constant dense<0.000000e+00> : vector<64x16xf32>
    %13 = tpu.matmul %11, %12, %cst_12 {dimension_numbers = #tpu.dot_dimension_numbers<[1], [0], [0], [1], [0, 0, 1, 1], [], []>} : vector<64x16xbf16>, vector<16x16xbf16>, vector<64x16xf32> -> vector<64x16xf32>
    %c0_13 = arith.constant 0 : index
    %c0_14 = arith.constant 0 : index
    %14 = vector.load %arg6[%c0_13, %c0_14] : memref<1x16xf32, #tpu.memory_space<vmem>>, vector<1x16xf32>
    %15 = vector.broadcast %14 : vector<1x16xf32> to vector<64x16xf32>
    %16 = arith.addf %13, %15 : vector<64x16xf32>
    %cst_15 = arith.constant 0.000000e+00 : f32
    %17 = vector.broadcast %cst_15 : f32 to vector<64x16xf32>
    %18 = arith.maximumf %16, %17 : vector<64x16xf32>
    %19 = arith.truncf %18 : vector<64x16xf32> to vector<64x16xbf16>
    %c0_16 = arith.constant 0 : index
    %c0_17 = arith.constant 0 : index
    %20 = vector.load %arg7[%c0_16, %c0_17] : memref<16x16xbf16, #tpu.memory_space<vmem>>, vector<16x16xbf16>
    %cst_18 = arith.constant dense<0.000000e+00> : vector<64x16xf32>
    %21 = tpu.matmul %19, %20, %cst_18 {dimension_numbers = #tpu.dot_dimension_numbers<[1], [0], [0], [1], [0, 0, 1, 1], [], []>} : vector<64x16xbf16>, vector<16x16xbf16>, vector<64x16xf32> -> vector<64x16xf32>
    %c0_19 = arith.constant 0 : index
    %c0_20 = arith.constant 0 : index
    %22 = vector.load %arg8[%c0_19, %c0_20] : memref<1x16xf32, #tpu.memory_space<vmem>>, vector<1x16xf32>
    %23 = vector.broadcast %22 : vector<1x16xf32> to vector<64x16xf32>
    %24 = arith.addf %21, %23 : vector<64x16xf32>
    %cst_21 = arith.constant 0.000000e+00 : f32
    %25 = vector.broadcast %cst_21 : f32 to vector<64x16xf32>
    %26 = arith.maximumf %24, %25 : vector<64x16xf32>
    %27 = vector.broadcast %1 : vector<64x1xf32> to vector<64x16xf32>
    %28 = arith.mulf %26, %27 : vector<64x16xf32>
    %29 = vector.shape_cast %28 : vector<64x16xf32> to vector<8x8x16xf32>
    %cst_22 = arith.constant dense<0xFF800000> : vector<8x16xf32>
    %30 = vector.multi_reduction <maximumf>, %29, %cst_22 [1] : vector<8x8x16xf32> to vector<8x16xf32>
    %31 = arith.truncf %30 : vector<8x16xf32> to vector<8x16xbf16>
    %c0_23 = arith.constant 0 : index
    %c0_24 = arith.constant 0 : index
    %32 = vector.load %arg10[%c0_23, %c0_24] : memref<16x16xbf16, #tpu.memory_space<vmem>>, vector<16x16xbf16>
    %cst_25 = arith.constant dense<0.000000e+00> : vector<8x16xf32>
    %33 = tpu.matmul %31, %32, %cst_25 {dimension_numbers = #tpu.dot_dimension_numbers<[1], [0], [0], [1], [0, 0, 1, 1], [], []>} : vector<8x16xbf16>, vector<16x16xbf16>, vector<8x16xf32> -> vector<8x16xf32>
    %c0_26 = arith.constant 0 : index
    %c0_27 = arith.constant 0 : index
    %34 = vector.load %arg11[%c0_26, %c0_27] : memref<1x16xf32, #tpu.memory_space<vmem>>, vector<1x16xf32>
    %35 = vector.broadcast %34 : vector<1x16xf32> to vector<8x16xf32>
    %36 = arith.addf %33, %35 : vector<8x16xf32>
    %37 = arith.truncf %28 : vector<64x16xf32> to vector<64x16xbf16>
    %c0_28 = arith.constant 0 : index
    %c0_29 = arith.constant 0 : index
    %38 = vector.load %arg9[%c0_28, %c0_29] : memref<16x16xbf16, #tpu.memory_space<vmem>>, vector<16x16xbf16>
    %cst_30 = arith.constant dense<0.000000e+00> : vector<64x16xf32>
    %39 = tpu.matmul %37, %38, %cst_30 {dimension_numbers = #tpu.dot_dimension_numbers<[1], [0], [0], [1], [0, 0, 1, 1], [], []>} : vector<64x16xbf16>, vector<16x16xbf16>, vector<64x16xf32> -> vector<64x16xf32>
    %40 = vector.shape_cast %39 : vector<64x16xf32> to vector<8x8x16xf32>
    %41 = vector.shape_cast %36 : vector<8x16xf32> to vector<8x1x16xf32>
    %42 = vector.broadcast %41 : vector<8x1x16xf32> to vector<8x8x16xf32>
    %43 = arith.addf %40, %42 : vector<8x8x16xf32>
    %cst_31 = arith.constant 0.000000e+00 : f32
    %44 = vector.broadcast %cst_31 : f32 to vector<8x8x16xf32>
    %45 = arith.maximumf %43, %44 : vector<8x8x16xf32>
    %46 = vector.shape_cast %45 : vector<8x8x16xf32> to vector<64x16xf32>
    %47 = arith.truncf %46 : vector<64x16xf32> to vector<64x16xbf16>
    %c0_32 = arith.constant 0 : index
    %c0_33 = arith.constant 0 : index
    %48 = vector.load %arg12[%c0_32, %c0_33] : memref<16x16xbf16, #tpu.memory_space<vmem>>, vector<16x16xbf16>
    %cst_34 = arith.constant dense<0.000000e+00> : vector<64x16xf32>
    %49 = tpu.matmul %47, %48, %cst_34 {dimension_numbers = #tpu.dot_dimension_numbers<[1], [0], [0], [1], [0, 0, 1, 1], [], []>} : vector<64x16xbf16>, vector<16x16xbf16>, vector<64x16xf32> -> vector<64x16xf32>
    %c0_35 = arith.constant 0 : index
    %c0_36 = arith.constant 0 : index
    %50 = vector.load %arg13[%c0_35, %c0_36] : memref<1x16xf32, #tpu.memory_space<vmem>>, vector<1x16xf32>
    %51 = vector.broadcast %50 : vector<1x16xf32> to vector<64x16xf32>
    %52 = arith.addf %49, %51 : vector<64x16xf32>
    %cst_37 = arith.constant 0.000000e+00 : f32
    %53 = vector.broadcast %cst_37 : f32 to vector<64x16xf32>
    %54 = arith.maximumf %52, %53 : vector<64x16xf32>
    %55 = vector.broadcast %1 : vector<64x1xf32> to vector<64x16xf32>
    %56 = arith.mulf %54, %55 : vector<64x16xf32>
    %57 = vector.shape_cast %56 : vector<64x16xf32> to vector<8x8x16xf32>
    %cst_38 = arith.constant dense<0xFF800000> : vector<8x16xf32>
    %58 = vector.multi_reduction <maximumf>, %57, %cst_38 [1] : vector<8x8x16xf32> to vector<8x16xf32>
    %59 = arith.truncf %58 : vector<8x16xf32> to vector<8x16xbf16>
    %c0_39 = arith.constant 0 : index
    %c0_40 = arith.constant 0 : index
    %60 = vector.load %arg14[%c0_39, %c0_40] : memref<16x16xbf16, #tpu.memory_space<vmem>>, vector<16x16xbf16>
    %cst_41 = arith.constant dense<0.000000e+00> : vector<8x16xf32>
    %61 = tpu.matmul %59, %60, %cst_41 {dimension_numbers = #tpu.dot_dimension_numbers<[1], [0], [0], [1], [0, 0, 1, 1], [], []>} : vector<8x16xbf16>, vector<16x16xbf16>, vector<8x16xf32> -> vector<8x16xf32>
    %c0_42 = arith.constant 0 : index
    %c0_43 = arith.constant 0 : index
    %62 = vector.load %arg15[%c0_42, %c0_43] : memref<1x16xf32, #tpu.memory_space<vmem>>, vector<1x16xf32>
    %63 = vector.broadcast %62 : vector<1x16xf32> to vector<8x16xf32>
    %64 = arith.addf %61, %63 : vector<8x16xf32>
    %cst_44 = arith.constant 0.000000e+00 : f32
    %65 = vector.broadcast %cst_44 : f32 to vector<8x16xf32>
    %66 = arith.maximumf %64, %65 : vector<8x16xf32>
    %67 = arith.truncf %66 : vector<8x16xf32> to vector<8x16xbf16>
    %c0_45 = arith.constant 0 : index
    %c0_46 = arith.constant 0 : index
    %68 = vector.load %arg16[%c0_45, %c0_46] : memref<16x32xbf16, #tpu.memory_space<vmem>>, vector<16x32xbf16>
    %cst_47 = arith.constant dense<0.000000e+00> : vector<8x32xf32>
    %69 = tpu.matmul %67, %68, %cst_47 {dimension_numbers = #tpu.dot_dimension_numbers<[1], [0], [0], [1], [0, 0, 1, 1], [], []>} : vector<8x16xbf16>, vector<16x32xbf16>, vector<8x32xf32> -> vector<8x32xf32>
    %c0_48 = arith.constant 0 : index
    %c0_49 = arith.constant 0 : index
    %70 = vector.load %arg17[%c0_48, %c0_49] : memref<1x32xf32, #tpu.memory_space<vmem>>, vector<1x32xf32>
    %71 = vector.broadcast %70 : vector<1x32xf32> to vector<8x32xf32>
    %72 = arith.addf %69, %71 : vector<8x32xf32>
    %73 = vector.broadcast %2 : vector<8x1xf32> to vector<8x32xf32>
    %74 = arith.mulf %72, %73 : vector<8x32xf32>
    %75 = vector.extract_strided_slice %74 {offsets = [0, 0], sizes = [4, 32], strides = [1, 1]} : vector<8x32xf32> to vector<4x32xf32>
    %c0_50 = arith.constant 0 : index
    %c0_51 = arith.constant 0 : index
    %76 = vector.load %arg46[%c0_50, %c0_51] : memref<26x32xf32, #tpu.memory_space<vmem>>, vector<4x32xf32>
    tpu.vector_store %arg46[%c0_50, %c0_51], %75 {strides = array<i32>} : memref<26x32xf32, #tpu.memory_space<vmem>>, vector<4x32xf32>,
    %77 = vector.extract_strided_slice %74 {offsets = [4, 0], sizes = [4, 32], strides = [1, 1]} : vector<8x32xf32> to vector<4x32xf32>
    %c13 = arith.constant 13 : index
    %c0_52 = arith.constant 0 : index
    %78 = vector.load %arg46[%c13, %c0_52] : memref<26x32xf32, #tpu.memory_space<vmem>>, vector<4x32xf32>
    tpu.vector_store %arg46[%c13, %c0_52], %77 {strides = array<i32>} : memref<26x32xf32, #tpu.memory_space<vmem>>, vector<4x32xf32>,
    %c0_53 = arith.constant 0 : index
    %c0_54 = arith.constant 0 : index
    %79 = vector.load %arg18[%c0_53, %c0_54] : memref<96x24xf32, #tpu.memory_space<vmem>>, vector<96x24xf32>
    %c0_55 = arith.constant 0 : index
    %c0_56 = arith.constant 0 : index
    %80 = vector.load %arg19[%c0_55, %c0_56] : memref<96x1xf32, #tpu.memory_space<vmem>>, vector<96x1xf32>
    %c0_57 = arith.constant 0 : index
    %c0_58 = arith.constant 0 : index
    %81 = vector.load %arg20[%c0_57, %c0_58] : memref<12x1xf32, #tpu.memory_space<vmem>>, vector<12x1xf32>
    %82 = arith.truncf %79 : vector<96x24xf32> to vector<96x24xbf16>
    %c0_59 = arith.constant 0 : index
    %c0_60 = arith.constant 0 : index
    %83 = vector.load %arg21[%c0_59, %c0_60] : memref<24x16xbf16, #tpu.memory_space<vmem>>, vector<24x16xbf16>
    %cst_61 = arith.constant dense<0.000000e+00> : vector<96x16xf32>
    %84 = tpu.matmul %82, %83, %cst_61 {dimension_numbers = #tpu.dot_dimension_numbers<[1], [0], [0], [1], [0, 0, 1, 1], [], []>} : vector<96x24xbf16>, vector<24x16xbf16>, vector<96x16xf32> -> vector<96x16xf32>
    %c0_62 = arith.constant 0 : index
    %c0_63 = arith.constant 0 : index
    %85 = vector.load %arg22[%c0_62, %c0_63] : memref<1x16xf32, #tpu.memory_space<vmem>>, vector<1x16xf32>
    %86 = vector.broadcast %85 : vector<1x16xf32> to vector<96x16xf32>
    %87 = arith.addf %84, %86 : vector<96x16xf32>
    %cst_64 = arith.constant 0.000000e+00 : f32
    %88 = vector.broadcast %cst_64 : f32 to vector<96x16xf32>
    %89 = arith.maximumf %87, %88 : vector<96x16xf32>
    %90 = vector.broadcast %80 : vector<96x1xf32> to vector<96x16xf32>
    %91 = arith.mulf %89, %90 : vector<96x16xf32>
    %92 = vector.shape_cast %91 : vector<96x16xf32> to vector<12x8x16xf32>
    %cst_65 = arith.constant dense<0xFF800000> : vector<12x16xf32>
    %93 = vector.multi_reduction <maximumf>, %92, %cst_65 [1] : vector<12x8x16xf32> to vector<12x16xf32>
    %94 = arith.truncf %93 : vector<12x16xf32> to vector<12x16xbf16>
    %c0_66 = arith.constant 0 : index
    %c0_67 = arith.constant 0 : index
    %95 = vector.load %arg24[%c0_66, %c0_67] : memref<16x16xbf16, #tpu.memory_space<vmem>>, vector<16x16xbf16>
    %cst_68 = arith.constant dense<0.000000e+00> : vector<12x16xf32>
    %96 = tpu.matmul %94, %95, %cst_68 {dimension_numbers = #tpu.dot_dimension_numbers<[1], [0], [0], [1], [0, 0, 1, 1], [], []>} : vector<12x16xbf16>, vector<16x16xbf16>, vector<12x16xf32> -> vector<12x16xf32>
    %c0_69 = arith.constant 0 : index
    %c0_70 = arith.constant 0 : index
    %97 = vector.load %arg25[%c0_69, %c0_70] : memref<1x16xf32, #tpu.memory_space<vmem>>, vector<1x16xf32>
    %98 = vector.broadcast %97 : vector<1x16xf32> to vector<12x16xf32>
    %99 = arith.addf %96, %98 : vector<12x16xf32>
    %100 = arith.truncf %91 : vector<96x16xf32> to vector<96x16xbf16>
    %c0_71 = arith.constant 0 : index
    %c0_72 = arith.constant 0 : index
    %101 = vector.load %arg23[%c0_71, %c0_72] : memref<16x16xbf16, #tpu.memory_space<vmem>>, vector<16x16xbf16>
    %cst_73 = arith.constant dense<0.000000e+00> : vector<96x16xf32>
    %102 = tpu.matmul %100, %101, %cst_73 {dimension_numbers = #tpu.dot_dimension_numbers<[1], [0], [0], [1], [0, 0, 1, 1], [], []>} : vector<96x16xbf16>, vector<16x16xbf16>, vector<96x16xf32> -> vector<96x16xf32>
    %103 = vector.shape_cast %102 : vector<96x16xf32> to vector<12x8x16xf32>
    %104 = vector.shape_cast %99 : vector<12x16xf32> to vector<12x1x16xf32>
    %105 = vector.broadcast %104 : vector<12x1x16xf32> to vector<12x8x16xf32>
    %106 = arith.addf %103, %105 : vector<12x8x16xf32>
    %cst_74 = arith.constant 0.000000e+00 : f32
    %107 = vector.broadcast %cst_74 : f32 to vector<12x8x16xf32>
    %108 = arith.maximumf %106, %107 : vector<12x8x16xf32>
    %109 = vector.shape_cast %108 : vector<12x8x16xf32> to vector<96x16xf32>
    %110 = arith.truncf %109 : vector<96x16xf32> to vector<96x16xbf16>
    %c0_75 = arith.constant 0 : index
    %c0_76 = arith.constant 0 : index
    %111 = vector.load %arg26[%c0_75, %c0_76] : memref<16x16xbf16, #tpu.memory_space<vmem>>, vector<16x16xbf16>
    %cst_77 = arith.constant dense<0.000000e+00> : vector<96x16xf32>
    %112 = tpu.matmul %110, %111, %cst_77 {dimension_numbers = #tpu.dot_dimension_numbers<[1], [0], [0], [1], [0, 0, 1, 1], [], []>} : vector<96x16xbf16>, vector<16x16xbf16>, vector<96x16xf32> -> vector<96x16xf32>
    %c0_78 = arith.constant 0 : index
    %c0_79 = arith.constant 0 : index
    %113 = vector.load %arg27[%c0_78, %c0_79] : memref<1x16xf32, #tpu.memory_space<vmem>>, vector<1x16xf32>
    %114 = vector.broadcast %113 : vector<1x16xf32> to vector<96x16xf32>
    %115 = arith.addf %112, %114 : vector<96x16xf32>
    %cst_80 = arith.constant 0.000000e+00 : f32
    %116 = vector.broadcast %cst_80 : f32 to vector<96x16xf32>
    %117 = arith.maximumf %115, %116 : vector<96x16xf32>
    %118 = vector.broadcast %80 : vector<96x1xf32> to vector<96x16xf32>
    %119 = arith.mulf %117, %118 : vector<96x16xf32>
    %120 = vector.shape_cast %119 : vector<96x16xf32> to vector<12x8x16xf32>
    %cst_81 = arith.constant dense<0xFF800000> : vector<12x16xf32>
    %121 = vector.multi_reduction <maximumf>, %120, %cst_81 [1] : vector<12x8x16xf32> to vector<12x16xf32>
    %122 = arith.truncf %121 : vector<12x16xf32> to vector<12x16xbf16>
    %c0_82 = arith.constant 0 : index
    %c0_83 = arith.constant 0 : index
    %123 = vector.load %arg28[%c0_82, %c0_83] : memref<16x16xbf16, #tpu.memory_space<vmem>>, vector<16x16xbf16>
    %cst_84 = arith.constant dense<0.000000e+00> : vector<12x16xf32>
    %124 = tpu.matmul %122, %123, %cst_84 {dimension_numbers = #tpu.dot_dimension_numbers<[1], [0], [0], [1], [0, 0, 1, 1], [], []>} : vector<12x16xbf16>, vector<16x16xbf16>, vector<12x16xf32> -> vector<12x16xf32>
    %c0_85 = arith.constant 0 : index
    %c0_86 = arith.constant 0 : index
    %125 = vector.load %arg29[%c0_85, %c0_86] : memref<1x16xf32, #tpu.memory_space<vmem>>, vector<1x16xf32>
    %126 = vector.broadcast %125 : vector<1x16xf32> to vector<12x16xf32>
    %127 = arith.addf %124, %126 : vector<12x16xf32>
    %cst_87 = arith.constant 0.000000e+00 : f32
    %128 = vector.broadcast %cst_87 : f32 to vector<12x16xf32>
    %129 = arith.maximumf %127, %128 : vector<12x16xf32>
    %130 = arith.truncf %129 : vector<12x16xf32> to vector<12x16xbf16>
    %c0_88 = arith.constant 0 : index
    %c0_89 = arith.constant 0 : index
    %131 = vector.load %arg30[%c0_88, %c0_89] : memref<16x32xbf16, #tpu.memory_space<vmem>>, vector<16x32xbf16>
    %cst_90 = arith.constant dense<0.000000e+00> : vector<12x32xf32>
    %132 = tpu.matmul %130, %131, %cst_90 {dimension_numbers = #tpu.dot_dimension_numbers<[1], [0], [0], [1], [0, 0, 1, 1], [], []>} : vector<12x16xbf16>, vector<16x32xbf16>, vector<12x32xf32> -> vector<12x32xf32>
    %c0_91 = arith.constant 0 : index
    %c0_92 = arith.constant 0 : index
    %133 = vector.load %arg31[%c0_91, %c0_92] : memref<1x32xf32, #tpu.memory_space<vmem>>, vector<1x32xf32>
    %134 = vector.broadcast %133 : vector<1x32xf32> to vector<12x32xf32>
    %135 = arith.addf %132, %134 : vector<12x32xf32>
    %136 = vector.broadcast %81 : vector<12x1xf32> to vector<12x32xf32>
    %137 = arith.mulf %135, %136 : vector<12x32xf32>
    %138 = vector.extract_strided_slice %137 {offsets = [0, 0], sizes = [6, 32], strides = [1, 1]} : vector<12x32xf32> to vector<6x32xf32>
    %c4 = arith.constant 4 : index
    %c0_93 = arith.constant 0 : index
    %139 = vector.load %arg46[%c4, %c0_93] : memref<26x32xf32, #tpu.memory_space<vmem>>, vector<6x32xf32>
    tpu.vector_store %arg46[%c4, %c0_93], %138 {strides = array<i32>} : memref<26x32xf32, #tpu.memory_space<vmem>>, vector<6x32xf32>,
    %140 = vector.extract_strided_slice %137 {offsets = [6, 0], sizes = [6, 32], strides = [1, 1]} : vector<12x32xf32> to vector<6x32xf32>
    %c17 = arith.constant 17 : index
    %c0_94 = arith.constant 0 : index
    %141 = vector.load %arg46[%c17, %c0_94] : memref<26x32xf32, #tpu.memory_space<vmem>>, vector<6x32xf32>
    tpu.vector_store %arg46[%c17, %c0_94], %140 {strides = array<i32>} : memref<26x32xf32, #tpu.memory_space<vmem>>, vector<6x32xf32>,
    %c0_95 = arith.constant 0 : index
    %c0_96 = arith.constant 0 : index
    %142 = vector.load %arg32[%c0_95, %c0_96] : memref<48x12xf32, #tpu.memory_space<vmem>>, vector<48x12xf32>
    %c0_97 = arith.constant 0 : index
    %c0_98 = arith.constant 0 : index
    %143 = vector.load %arg33[%c0_97, %c0_98] : memref<48x1xf32, #tpu.memory_space<vmem>>, vector<48x1xf32>
    %c0_99 = arith.constant 0 : index
    %c0_100 = arith.constant 0 : index
    %144 = vector.load %arg34[%c0_99, %c0_100] : memref<6x1xf32, #tpu.memory_space<vmem>>, vector<6x1xf32>
    %145 = arith.truncf %142 : vector<48x12xf32> to vector<48x12xbf16>
    %c0_101 = arith.constant 0 : index
    %c0_102 = arith.constant 0 : index
    %146 = vector.load %arg35[%c0_101, %c0_102] : memref<12x16xbf16, #tpu.memory_space<vmem>>, vector<12x16xbf16>
    %cst_103 = arith.constant dense<0.000000e+00> : vector<48x16xf32>
    %147 = tpu.matmul %145, %146, %cst_103 {dimension_numbers = #tpu.dot_dimension_numbers<[1], [0], [0], [1], [0, 0, 1, 1], [], []>} : vector<48x12xbf16>, vector<12x16xbf16>, vector<48x16xf32> -> vector<48x16xf32>
    %c0_104 = arith.constant 0 : index
    %c0_105 = arith.constant 0 : index
    %148 = vector.load %arg36[%c0_104, %c0_105] : memref<1x16xf32, #tpu.memory_space<vmem>>, vector<1x16xf32>
    %149 = vector.broadcast %148 : vector<1x16xf32> to vector<48x16xf32>
    %150 = arith.addf %147, %149 : vector<48x16xf32>
    %cst_106 = arith.constant 0.000000e+00 : f32
    %151 = vector.broadcast %cst_106 : f32 to vector<48x16xf32>
    %152 = arith.maximumf %150, %151 : vector<48x16xf32>
    %153 = vector.broadcast %143 : vector<48x1xf32> to vector<48x16xf32>
    %154 = arith.mulf %152, %153 : vector<48x16xf32>
    %155 = vector.shape_cast %154 : vector<48x16xf32> to vector<6x8x16xf32>
    %cst_107 = arith.constant dense<0xFF800000> : vector<6x16xf32>
    %156 = vector.multi_reduction <maximumf>, %155, %cst_107 [1] : vector<6x8x16xf32> to vector<6x16xf32>
    %157 = arith.truncf %156 : vector<6x16xf32> to vector<6x16xbf16>
    %c0_108 = arith.constant 0 : index
    %c0_109 = arith.constant 0 : index
    %158 = vector.load %arg38[%c0_108, %c0_109] : memref<16x16xbf16, #tpu.memory_space<vmem>>, vector<16x16xbf16>
    %cst_110 = arith.constant dense<0.000000e+00> : vector<6x16xf32>
    %159 = tpu.matmul %157, %158, %cst_110 {dimension_numbers = #tpu.dot_dimension_numbers<[1], [0], [0], [1], [0, 0, 1, 1], [], []>} : vector<6x16xbf16>, vector<16x16xbf16>, vector<6x16xf32> -> vector<6x16xf32>
    %c0_111 = arith.constant 0 : index
    %c0_112 = arith.constant 0 : index
    %160 = vector.load %arg39[%c0_111, %c0_112] : memref<1x16xf32, #tpu.memory_space<vmem>>, vector<1x16xf32>
    %161 = vector.broadcast %160 : vector<1x16xf32> to vector<6x16xf32>
    %162 = arith.addf %159, %161 : vector<6x16xf32>
    %163 = arith.truncf %154 : vector<48x16xf32> to vector<48x16xbf16>
    %c0_113 = arith.constant 0 : index
    %c0_114 = arith.constant 0 : index
    %164 = vector.load %arg37[%c0_113, %c0_114] : memref<16x16xbf16, #tpu.memory_space<vmem>>, vector<16x16xbf16>
    %cst_115 = arith.constant dense<0.000000e+00> : vector<48x16xf32>
    %165 = tpu.matmul %163, %164, %cst_115 {dimension_numbers = #tpu.dot_dimension_numbers<[1], [0], [0], [1], [0, 0, 1, 1], [], []>} : vector<48x16xbf16>, vector<16x16xbf16>, vector<48x16xf32> -> vector<48x16xf32>
    %166 = vector.shape_cast %165 : vector<48x16xf32> to vector<6x8x16xf32>
    %167 = vector.shape_cast %162 : vector<6x16xf32> to vector<6x1x16xf32>
    %168 = vector.broadcast %167 : vector<6x1x16xf32> to vector<6x8x16xf32>
    %169 = arith.addf %166, %168 : vector<6x8x16xf32>
    %cst_116 = arith.constant 0.000000e+00 : f32
    %170 = vector.broadcast %cst_116 : f32 to vector<6x8x16xf32>
    %171 = arith.maximumf %169, %170 : vector<6x8x16xf32>
    %172 = vector.shape_cast %171 : vector<6x8x16xf32> to vector<48x16xf32>
    %173 = arith.truncf %172 : vector<48x16xf32> to vector<48x16xbf16>
    %c0_117 = arith.constant 0 : index
    %c0_118 = arith.constant 0 : index
    %174 = vector.load %arg40[%c0_117, %c0_118] : memref<16x16xbf16, #tpu.memory_space<vmem>>, vector<16x16xbf16>
    %cst_119 = arith.constant dense<0.000000e+00> : vector<48x16xf32>
    %175 = tpu.matmul %173, %174, %cst_119 {dimension_numbers = #tpu.dot_dimension_numbers<[1], [0], [0], [1], [0, 0, 1, 1], [], []>} : vector<48x16xbf16>, vector<16x16xbf16>, vector<48x16xf32> -> vector<48x16xf32>
    %c0_120 = arith.constant 0 : index
    %c0_121 = arith.constant 0 : index
    %176 = vector.load %arg41[%c0_120, %c0_121] : memref<1x16xf32, #tpu.memory_space<vmem>>, vector<1x16xf32>
    %177 = vector.broadcast %176 : vector<1x16xf32> to vector<48x16xf32>
    %178 = arith.addf %175, %177 : vector<48x16xf32>
    %cst_122 = arith.constant 0.000000e+00 : f32
    %179 = vector.broadcast %cst_122 : f32 to vector<48x16xf32>
    %180 = arith.maximumf %178, %179 : vector<48x16xf32>
    %181 = vector.broadcast %143 : vector<48x1xf32> to vector<48x16xf32>
    %182 = arith.mulf %180, %181 : vector<48x16xf32>
    %183 = vector.shape_cast %182 : vector<48x16xf32> to vector<6x8x16xf32>
    %cst_123 = arith.constant dense<0xFF800000> : vector<6x16xf32>
    %184 = vector.multi_reduction <maximumf>, %183, %cst_123 [1] : vector<6x8x16xf32> to vector<6x16xf32>
    %185 = arith.truncf %184 : vector<6x16xf32> to vector<6x16xbf16>
    %c0_124 = arith.constant 0 : index
    %c0_125 = arith.constant 0 : index
    %186 = vector.load %arg42[%c0_124, %c0_125] : memref<16x16xbf16, #tpu.memory_space<vmem>>, vector<16x16xbf16>
    %cst_126 = arith.constant dense<0.000000e+00> : vector<6x16xf32>
    %187 = tpu.matmul %185, %186, %cst_126 {dimension_numbers = #tpu.dot_dimension_numbers<[1], [0], [0], [1], [0, 0, 1, 1], [], []>} : vector<6x16xbf16>, vector<16x16xbf16>, vector<6x16xf32> -> vector<6x16xf32>
    %c0_127 = arith.constant 0 : index
    %c0_128 = arith.constant 0 : index
    %188 = vector.load %arg43[%c0_127, %c0_128] : memref<1x16xf32, #tpu.memory_space<vmem>>, vector<1x16xf32>
    %189 = vector.broadcast %188 : vector<1x16xf32> to vector<6x16xf32>
    %190 = arith.addf %187, %189 : vector<6x16xf32>
    %cst_129 = arith.constant 0.000000e+00 : f32
    %191 = vector.broadcast %cst_129 : f32 to vector<6x16xf32>
    %192 = arith.maximumf %190, %191 : vector<6x16xf32>
    %193 = arith.truncf %192 : vector<6x16xf32> to vector<6x16xbf16>
    %c0_130 = arith.constant 0 : index
    %c0_131 = arith.constant 0 : index
    %194 = vector.load %arg44[%c0_130, %c0_131] : memref<16x32xbf16, #tpu.memory_space<vmem>>, vector<16x32xbf16>
    %cst_132 = arith.constant dense<0.000000e+00> : vector<6x32xf32>
    %195 = tpu.matmul %193, %194, %cst_132 {dimension_numbers = #tpu.dot_dimension_numbers<[1], [0], [0], [1], [0, 0, 1, 1], [], []>} : vector<6x16xbf16>, vector<16x32xbf16>, vector<6x32xf32> -> vector<6x32xf32>
    %c0_133 = arith.constant 0 : index
    %c0_134 = arith.constant 0 : index
    %196 = vector.load %arg45[%c0_133, %c0_134] : memref<1x32xf32, #tpu.memory_space<vmem>>, vector<1x32xf32>
    %197 = vector.broadcast %196 : vector<1x32xf32> to vector<6x32xf32>
    %198 = arith.addf %195, %197 : vector<6x32xf32>
    %199 = vector.broadcast %144 : vector<6x1xf32> to vector<6x32xf32>
    %200 = arith.mulf %198, %199 : vector<6x32xf32>
    %201 = vector.extract_strided_slice %200 {offsets = [0, 0], sizes = [3, 32], strides = [1, 1]} : vector<6x32xf32> to vector<3x32xf32>
    %c10 = arith.constant 10 : index
    %c0_135 = arith.constant 0 : index
    %202 = vector.load %arg46[%c10, %c0_135] : memref<26x32xf32, #tpu.memory_space<vmem>>, vector<3x32xf32>
    tpu.vector_store %arg46[%c10, %c0_135], %201 {strides = array<i32>} : memref<26x32xf32, #tpu.memory_space<vmem>>, vector<3x32xf32>,
    %203 = vector.extract_strided_slice %200 {offsets = [3, 0], sizes = [3, 32], strides = [1, 1]} : vector<6x32xf32> to vector<3x32xf32>
    %c23 = arith.constant 23 : index
    %c0_136 = arith.constant 0 : index
    %204 = vector.load %arg46[%c23, %c0_136] : memref<26x32xf32, #tpu.memory_space<vmem>>, vector<3x32xf32>
    tpu.vector_store %arg46[%c23, %c0_136], %203 {strides = array<i32>} : memref<26x32xf32, #tpu.memory_space<vmem>>, vector<3x32xf32>,
    return
  }
}

</mosaic_0001>

<bundles_post_ra>
// kernel: multimodal_encoder_forward.1
= control target key start
LH: loop header
LB: loop body
LE: loop exit
PB: predicated region body
PF: predicated region fallthrough
CT: control target
= control target key end

     0   :  { %s2440_s3 = smov 3   ;;  %vm236_vm0 = vcmask 1045504   ;;  %vm237_vm1 = vcmask 1046528   ;;  %v2441_v0 = vmov 65535   ;;  %s2442_s10 = smov 4   ;;  %vm223_vm2 = vcmask 105472   ;;  %s3069_s0 = inlined_call_operand.smem [shape: u32[47], index: -1, kind: input, shape index: {}] }
   0x1   :  { %s2171_s6 = sld [smem:[%s3069_s0 + %s2440_s3]]   ;;  %v238_v1 = vsel %vm236_vm0, 4294967295, %v2441_v0  ;;  %s2443_s14 = smov 6   ;;  %vm296_vm3 = vcmask 130048   ;;  %v2447_v50 = vmov 0   ;;  %vm545_vm4 = vcmask 1041409  }
   0x2   :  { %s1_s9 = sld [smem:[%s3069_s0]]   ;;  %v239_v4 = vsel %vm237_vm1, %v238_v1, 0  ;;  %s2444_s18 = smov 5   ;;  %2420 = vset.pattern.permute.xlu0 %v2447_v50  ;;  %2421 = vset.pattern.permute.xlu1 %v2447_v50  ;;  %vm547_vm5 = vcmask 1042434   ;;  %vm549_vm6 = vcmask 1043459   ;;  %vm551_vm7 = vcmask 1044484  }
   0x3   :  { %s2503_s13 = sld [smem:[%s3069_s0 + %s2442_s10]]   ;;  %s2445_s22 = smov 7   ;;  %2422 = vset.pattern.permute.xlu2 %v2447_v50  ;;  %vm553_vm8 = vcmask 1045509   ;;  %vm555_vm9 = vcmask 1046534   ;;  %vm557_vm10 = vcmask 1047559   ;;  %vm971_vm11 = vcmask 1043456  }
   0x4   :  { %s2508_s17 = sld [smem:[%s3069_s0 + %s2443_s14]]   ;;  %s2446_s26 = smov 1   ;;  %vm952_vm12 = vcmask 195584   ;;  %vm900_vm13 = vcmask 257024   ;;  %vm902_vm14 = vcmask 261124   ;;  %vm1724_vm15 = vcmask 97280  }
   0x5   :  { %s2173_s21 = sld [smem:[%s3069_s0 + %s2444_s18]]   ;;  %s2448_s30 = smov 8   ;;  %vm1694_vm1 = vcmask 261126  }
   0x6   :  { %s2175_s25 = sld [smem:[%s3069_s0 + %s2445_s22]]   ;;  %s2449_s4 = smov 19  }
   0x7   :  { %v2217_v2 = vld [vmem:[%s2171_s6] sm:$0xf]  ;;  %v2351_v3 = vld [vmem:[%s2171_s6] sm:$0x70]  ;;  %s2524_s29 = sld [smem:[%s3069_s0 + %s2446_s26]]   ;;  %s2450_s8 = smov 33  }
   0x8   :  { %v2218_v5 = vor.u32 %v2351_v3, %v2217_v2  ;;  %v191_v6 = vld [vmem:[%s1_s9] sm:$0xff]  ;;  %v192_v7 = vld [vmem:[%s1_s9 + $0x8] sm:$0xff]  ;;  %v193_v10 = vld [vmem:[%s1_s9 + $0x10] sm:$0xff]  ;;  %s2533_s3 = sld [smem:[%s3069_s0 + %s2448_s30]]   ;;  %s2451_s12 = smov 20  }
   0x9   :  { %v208_v9 = vpack.c.bf16 %v192_v7, %v191_v6  ;;  %v194_v11 = vld [vmem:[%s1_s9 + $0x18] sm:$0xff]  ;;  %v195_v13 = vld [vmem:[%s1_s9 + $0x20] sm:$0xff]  ;;  %v196_v14 = vld [vmem:[%s1_s9 + $0x28] sm:$0xff]  ;;  %s2539_s7 = sld [smem:[%s3069_s0 + %s2449_s4]]   ;;  %s2452_s16 = smov 2  }
   0xa   :  { %v241_v8 = vand.u32 %v2218_v5, %v239_v4  ;;  %v209_v12 = vpack.c.bf16 %v194_v11, %v193_v10  ;;  %v210_v15 = vpack.c.bf16 %v196_v14, %v195_v13  ;;  %v197_v16 = vld [vmem:[%s1_s9 + $0x30] sm:$0xff]  ;;  %v198_v17 = vld [vmem:[%s1_s9 + $0x38] sm:$0xff]  ;;  %v2423_v21 = vld [vmem:[%s2503_s13] ss:$0 sm:$0xff]  ;;  %s2562_s11 = sld [smem:[%s3069_s0 + %s2450_s8]]   ;;  %s2453_s20 = smov 34  }
   0xb   :  { %v211_v18 = vpack.c.bf16 %v198_v17, %v197_v16  ;;  %v2352_v19 = vld [vmem:[%s2173_s21] sm:$0xff]  ;;  %s2188_s15 = sld [smem:[%s3069_s0 + %s2451_s12]]   ;;  %s2454_s24 = smov 11  }
   0xc   :  { %250 = vmatpush.bf16.msra.mxu0 %v241_v8  ;;  %316 = vmatpush.bf16.msra.mxu1 %v2352_v19  ;;  %v2353_v49 = vld [vmem:[%s2175_s25] sm:$0xff]  ;;  %s2170_s19 = sld [smem:[%s3069_s0 + %s2452_s16]]   ;;  %s2455_s28 = smov 10  }
   0xd   :  { %2371 = vmatpush.bf16.msra.mxu2 %v2352_v19  ;;  %v199_v51 = vld [vmem:[%s2524_s29] sm:$0xff]  ;;  %v201_v52 = vld [vmem:[%s2524_s29 + $0x10] sm:$0xff]  ;;  %v200_v53 = vld [vmem:[%s2524_s29 + $0x8] sm:$0xff]  ;;  %s2202_s23 = sld [smem:[%s3069_s0 + %s2453_s20]]   ;;  %s2456_s2 = smov 9  }
   0xe   :  { %413 = vperm.xlu0 %2420, %v199_v51   ;;  %423 = vperm.xlu1 %2421, %v201_v52   ;;  %v202_v54 = vld [vmem:[%s2524_s29 + $0x18] sm:$0xff]  ;;  %v205_v55 = vld [vmem:[%s2524_s29 + $0x30] sm:$0xff]  ;;  %v2545_v60 = vld [vmem:[%s2508_s17] ss:$0 sm:$0xff]  ;;  %s2594_s27 = sld [smem:[%s3069_s0 + %s2454_s24]]   ;;  %s2457_s6 = smov 12  }
   0xf   :  { %2219 = vmatmul.msk.bf16.vlgmr.msra.gmra.mxu0 %vm223_vm2, %v208_v9  ;;  %v206_v56 = vld [vmem:[%s2524_s29 + $0x38] sm:$0xff]  ;;  %v917_v58 = vld [vmem:[%s2539_s7 + $0x8] sm:$0xff]  ;;  %v918_v59 = vld [vmem:[%s2539_s7 + $0x10] sm:$0xff]  ;;  %s2178_s1 = sld [smem:[%s3069_s0 + %s2455_s28]]   ;;  %s2458_s10 = smov 13  }
  0x10   :  { %v203_v61 = vld [vmem:[%s2524_s29 + $0x20] sm:$0xff]  ;;  %v921_v2 = vld [vmem:[%s2539_s7 + $0x28] sm:$0xff]  ;;  %v922_v8 = vld [vmem:[%s2539_s7 + $0x30] sm:$0xff]  ;;  %s2177_s5 = sld [smem:[%s3069_s0 + %s2456_s2]]   ;;  %s2459_s14 = smov 14  }
  0x11   :  { %381 = vmatpush.bf16.msrb.mxu2 %v2353_v49  ;;  %433 = vperm.xlu2 %2422, %v203_v61   ;;  %v920_v0 = vld [vmem:[%s2539_s7 + $0x20] sm:$0xff]  ;;  %v204_v6 = vld [vmem:[%s2524_s29 + $0x28] sm:$0xff]  ;;  %v923_v13 = vld [vmem:[%s2539_s7 + $0x38] sm:$0xff]  ;;  %s2180_s9 = sld [smem:[%s3069_s0 + %s2457_s6]]   ;;  %s2460_s18 = smov 21  }
  0x12   :  { %v925_v7 = vld [vmem:[%s2539_s7 + $0x48] sm:$0xff]  ;;  %v916_v11 = vld [vmem:[%s2539_s7] sm:$0xff]  ;;  %v919_v19 = vld [vmem:[%s2539_s7 + $0x18] sm:$0xff]  ;;  %s2694_s13 = sld [smem:[%s3069_s0 + %s2458_s10]]   ;;  %s2461_s22 = smov 15  }
  0x13   :  { %v2599_v51 = vld [vmem:[%s2533_s3] ss:$0 sm:$0xff]  ;;  %s2182_s17 = sld [smem:[%s3069_s0 + %s2459_s14]]   ;;  %s2462_s26 = smov 18  }
  0x14   :  { %s2726_s21 = sld [smem:[%s3069_s0 + %s2460_s18]]   ;;  %s2463_s30 = smov 22  }
  0x15   :  { %s2736_s25 = sld [smem:[%s3069_s0 + %s2461_s22]]   ;;  %s2464_s4 = smov 16  }
  0x16   :  { %418 = vperm.xlu0 %2420, %v200_v53   ;;  %428 = vperm.xlu1 %2421, %v202_v54   ;;  %s2186_s29 = sld [smem:[%s3069_s0 + %s2462_s26]]   ;;  %s2465_s8 = smov 23  }
  0x17   :  { %s2757_s3 = sld [smem:[%s3069_s0 + %s2463_s30]]   ;;  %s2466_s12 = smov 17  }
  0x18   :  { %s2467_s16 = smov 24   ;;  %s2468_s20 = smov 25  }
  0x19   :  { %438 = vperm.xlu2 %2422, %v204_v6   ;;  %s2469_s24 = smov 46   ;;  %s2470_s28 = smov 26  }
  0x1a   :  { %s2471_s2 = smov 27   ;;  %s2472_s6 = smov 29  }
  0x1b   :  { %s2473_s10 = smov 28   ;;  %s2474_s14 = smov 30  }
  0x1c   :  { %s2475_s18 = smov 31   ;;  %s2476_s22 = smov 35  }
  0x1d   :  { %s2477_s26 = smov 32  }
  0x1e   :  { %443 = vperm.xlu0 %2420, %v205_v55   ;;  %448 = vperm.xlu1 %2421, %v206_v56   ;;  %s2200_s30 = sld [smem:[%s3069_s0 + %s2477_s26]]  }
  0x1f   :  { %2220 = vmatmul.msk.bf16.gmra.mxu0 %vm223_vm2, %v209_v12 }
  0x21   :  { %1028 = vperm.xlu2 %2422, %v916_v11  }
  0x26   :  { %1033 = vperm.xlu0 %2420, %v917_v58   ;;  %1038 = vperm.xlu1 %2421, %v918_v59  }
  0x29   :  { %1043 = vperm.xlu2 %2422, %v919_v19  }
  0x2e   :  { %1048 = vperm.xlu0 %2420, %v920_v0   ;;  %1053 = vperm.xlu1 %2421, %v921_v2  }
  0x2f   :  { %2221 = vmatmul.msk.bf16.gmra.mxu0 %vm223_vm2, %v210_v15  ;;  %v927_v15 = vld [vmem:[%s2539_s7 + $0x58] sm:$0xff] }
  0x36   :  { %1073 = vperm.xlu0 %2420, %v925_v7   ;;  %1058 = vperm.xlu1 %2421, %v922_v8  }
  0x3e   :  { %1063 = vperm.xlu0 %2420, %v923_v13   ;;  %1083 = vperm.xlu1 %2421, %v927_v15   ;;  %v2354_v15 = vld [vmem:[%s2178_s1] sm:$0xff]  ;;  %s2194_s1 = sld [smem:[%s3069_s0 + %s2470_s28]]  }
  0x3f   :  { %2222 = vmatmul.msk.bf16.gmra.mxu0 %vm223_vm2, %v211_v18  ;;  %576 = vmatpush.bf16.msra.mxu3 %v2354_v15  ;;  %vm2161_vm2 = vcmask 256000  }
  0x6b   :  { %v2604_v55 = vpop.permute.xlu2 %433 }
  0x80   :  { %v2596_v50 = vpop.permute.xlu0 %413  ;;  %v2601_v52 = vpop.permute.xlu1 %423 }
  0x88   :  { %v2613_v0 = vpop.permute.xlu0 %418 }
  0x8c   :  { %v252_v20 = vpop.f32.mrf.mxu0 }
  0x8d   :  { %v253_v22 = vadd.f32 %v2423_v21, %v252_v20 }
  0x8f   :  { %v272_v25 = vmax.f32 %v253_v22, 0.0  ;;  %v1705_v22 = vld [vmem:[%s2562_s11 + $0x10] sm:$0xff] }
  0x90   :  { %1779 = vperm.xlu1 %2421, %v1705_v22  }
  0x94   :  { %v254_v23 = vpop.f32.mrf.mxu0 }
  0x95   :  { %v255_v24 = vadd.f32 %v2423_v21, %v254_v23  ;;  %v924_v23 = vld [vmem:[%s2539_s7 + $0x40] sm:$0xff] }
  0x96   :  { %1068 = vperm.xlu2 %2422, %v924_v23  }
  0x97   :  { %v273_v26 = vmax.f32 %v255_v24, 0.0  ;;  %v1707_v24 = vld [vmem:[%s2562_s11 + $0x20] sm:$0xff] }
  0x99   :  { %v280_v27 = vpack.c.bf16 %v273_v26, %v272_v25  ;;  %v1708_v26 = vld [vmem:[%s2562_s11 + $0x28] sm:$0xff] }
  0x9a   :  { %1794 = vperm.xlu1 %2421, %v1708_v26  }
  0x9b   :  { %2227 = vmatmul.msk.bf16.vlgmr.msra.gmra.mxu1 %vm296_vm3, %v280_v27 }
  0x9c   :  { %v257_v28 = vpop.f32.mrf.mxu0 }
  0x9d   :  { %v258_v29 = vadd.f32 %v2423_v21, %v257_v28 }
  0x9f   :  { %v274_v32 = vmax.f32 %v258_v29, 0.0 }
  0xa4   :  { %v259_v30 = vpop.f32.mrf.mxu0 }
  0xa5   :  { %v260_v31 = vadd.f32 %v2423_v21, %v259_v30 }
  0xa7   :  { %v275_v33 = vmax.f32 %v260_v31, 0.0 }
  0xa9   :  { %v281_v34 = vpack.c.bf16 %v275_v33, %v274_v32  ;;  %v926_v32 = vld [vmem:[%s2539_s7 + $0x50] sm:$0xff]  ;;  %v928_v33 = vld [vmem:[%s2188_s15] sm:$0xff]  ;;  %s2184_s7 = sld [smem:[%s3069_s0 + %s2464_s4]]  }
  0xaa   :  { %1078 = vperm.xlu2 %2422, %v926_v32  }
  0xab   :  { %2228 = vmatmul.msk.bf16.gmra.mxu1 %vm296_vm3, %v281_v34  ;;  %v929_v34 = vld [vmem:[%s2188_s15 + $0x8] sm:$0xf]  ;;  %s2775_s15 = sld [smem:[%s3069_s0 + %s2466_s12]]  }
  0xac   :  { %v262_v35 = vpop.f32.mrf.mxu0  ;;  %1687 = vperm.xlu1 %2421, %v929_v34  }
  0xad   :  { %v263_v36 = vadd.f32 %v2423_v21, %v262_v35  ;;  %v1703_v35 = vld [vmem:[%s2562_s11] sm:$0xff] }
  0xaf   :  { %v276_v39 = vmax.f32 %v263_v36, 0.0 }
  0xb2   :  { %1769 = vperm.xlu2 %2422, %v1703_v35  }
  0xb4   :  { %v264_v37 = vpop.f32.mrf.mxu0 }
  0xb5   :  { %v265_v38 = vadd.f32 %v2423_v21, %v264_v37 }
  0xb7   :  { %v277_v40 = vmax.f32 %v265_v38, 0.0  ;;  %v1706_v38 = vld [vmem:[%s2562_s11 + $0x18] sm:$0xff] }
  0xb9   :  { %v282_v41 = vpack.c.bf16 %v277_v40, %v276_v39 }
  0xba   :  { %1784 = vperm.xlu2 %2422, %v1706_v38   ;;  %v2355_v38 = vld [vmem:[%s2177_s5] sm:$0xff]  ;;  %s2886_s5 = sld [smem:[%s3069_s0 + %s2471_s2]]  }
  0xbb   :  { %2229 = vmatmul.msk.bf16.gmra.mxu1 %vm296_vm3, %v282_v41  ;;  %613 = vmatpush.bf16.msrb.mxu3 %v2355_v38 }
  0xbc   :  { %v267_v42 = vpop.f32.mrf.mxu0 }
  0xbd   :  { %v268_v43 = vadd.f32 %v2423_v21, %v267_v42 }
  0xbf   :  { %v278_v46 = vmax.f32 %v268_v43, 0.0 }
  0xc4   :  { %v269_v44 = vpop.f32.mrf.mxu0 }
  0xc5   :  { %v270_v45 = vadd.f32 %v2423_v21, %v269_v44  ;;  %v1704_v21 = vld [vmem:[%s2562_s11 + $0x8] sm:$0xff]  ;;  %v207_v44 = vld [vmem:[%s2170_s19] sm:$0xff]  ;;  %s2191_s11 = sld [smem:[%s3069_s0 + %s2465_s8]]  }
  0xc6   :  { %1774 = vperm.xlu0 %2420, %v1704_v21   ;;  %896 = vperm.xlu2 %2422, %v207_v44   ;;  %s2192_s19 = sld [smem:[%s3069_s0 + %s2467_s16]]  }
  0xc7   :  { %v279_v47 = vmax.f32 %v270_v45, 0.0  ;;  %v1709_v45 = vld [vmem:[%s2202_s23] sm:$0x3f]  ;;  %s2193_s23 = sld [smem:[%s3069_s0 + %s2468_s20]]  }
  0xc9   :  { %v283_v48 = vpack.c.bf16 %v279_v47, %v278_v46 }
  0xcb   :  { %2230 = vmatmul.msk.bf16.vlgmr.msra.gmra.mxu2 %vm296_vm3, %v283_v48 }
  0xce   :  { %1789 = vperm.xlu0 %2420, %v1707_v24   ;;  %2157 = vperm.xlu2 %2422, %v1709_v45  }
  0xd6   :  { %1682 = vperm.xlu0 %2420, %v928_v33  }
 0x118   :  { %v318_v57 = vpop.f32.mrf.mxu1 }
 0x119   :  { %v319_v62 = vadd.f32 %v2545_v60, %v318_v57 }
 0x11b   :  { %v338_v3 = vmax.f32 %v319_v62, 0.0 }
 0x120   :  { %v320_v63 = vpop.f32.mrf.mxu1 }
 0x121   :  { %v321_v1 = vadd.f32 %v2545_v60, %v320_v63 }
 0x123   :  { %v339_v4 = vmax.f32 %v321_v1, 0.0 }
 0x125   :  { %v346_v5 = vpack.c.bf16 %v339_v4, %v338_v3 }
 0x127   :  { %2235 = vmatmul.msk.bf16.vlgmr.msrb.gmra.mxu2 %vm296_vm3, %v346_v5  ;;  %v2619_v5 = vpop.permute.xlu1 %428 }
 0x128   :  { %v323_v9 = vpop.f32.mrf.mxu1 }
 0x129   :  { %v324_v10 = vadd.f32 %v2545_v60, %v323_v9 }
 0x12b   :  { %v340_v16 = vmax.f32 %v324_v10, 0.0  ;;  %v2630_v10 = vpop.permute.xlu2 %438 }
 0x130   :  { %v325_v12 = vpop.f32.mrf.mxu1 }
 0x131   :  { %v326_v14 = vadd.f32 %v2545_v60, %v325_v12 }
 0x133   :  { %v341_v17 = vmax.f32 %v326_v14, 0.0 }
 0x135   :  { %v347_v18 = vpack.c.bf16 %v341_v17, %v340_v16 }
 0x137   :  { %2236 = vmatmul.msk.bf16.gmra.mxu2 %vm296_vm3, %v347_v18 }
 0x138   :  { %v328_v20 = vpop.f32.mrf.mxu1 }
 0x139   :  { %v329_v25 = vadd.f32 %v2545_v60, %v328_v20 }
 0x13b   :  { %v342_v29 = vmax.f32 %v329_v25, 0.0 }
 0x140   :  { %v330_v27 = vpop.f32.mrf.mxu1 }
 0x141   :  { %v331_v28 = vadd.f32 %v2545_v60, %v330_v27 }
 0x143   :  { %v343_v30 = vmax.f32 %v331_v28, 0.0 }
 0x145   :  { %v348_v31 = vpack.c.bf16 %v343_v30, %v342_v29 }
 0x147   :  { %2237 = vmatmul.msk.bf16.gmra.mxu2 %vm296_vm3, %v348_v31 }
 0x14e   :  { %v333_v36 = vpop.f32.mrf.mxu2 }
 0x14f   :  { %v334_v37 = vadd.f32 %v2545_v60, %v333_v36 }
 0x151   :  { %v344_v41 = vmax.f32 %v334_v37, 0.0 }
 0x156   :  { %v335_v39 = vpop.f32.mrf.mxu2 }
 0x157   :  { %v336_v40 = vadd.f32 %v2545_v60, %v335_v39  ;;  %v2656_v39 = vpop.permute.xlu0 %443 }
 0x159   :  { %v345_v42 = vmax.f32 %v336_v40, 0.0 }
 0x15b   :  { %v349_v43 = vpack.c.bf16 %v345_v42, %v344_v41 }
 0x15d   :  { %2238 = vmatmul.msk.bf16.gmra.mxu2 %vm296_vm3, %v349_v43 }
 0x1aa   :  { %v383_v46 = vpop.f32.mrf.mxu2 }
 0x1ab   :  { %v384_v57 = vadd.f32 %v2599_v51, %v383_v46 }
 0x1ad   :  { %v403_v62 = vmax.f32 %v384_v57, 0.0 }
 0x1af   :  { %v2625_v7 = vmul.f32 %v2596_v50, %v403_v62 }
 0x1b1   :  { %v459_v16 = vsel %vm296_vm3, %v2625_v7, -inf }
 0x1b2   :  { %v385_v47 = vpop.f32.mrf.mxu2  ;;  %v460_v23 = vrot.slane %v459_v16, 4 }
 0x1b3   :  { %v386_v54 = vadd.f32 %v2599_v51, %v385_v47 }
 0x1b4   :  { %v461_v29 = vmax.f32 %v459_v16, %v460_v23 }
 0x1b5   :  { %v404_v60 = vmax.f32 %v386_v54, 0.0 }
 0x1b6   :  { %v462_v40 = vrot.slane %v461_v29, 2 }
 0x1b7   :  { %v2616_v3 = vmul.f32 %v2613_v0, %v404_v60 }
 0x1b9   :  { %v466_v12 = vsel %vm296_vm3, %v2616_v3, -inf }
 0x1ba   :  { %v388_v48 = vpop.f32.mrf.mxu2  ;;  %v467_v19 = vrot.slane %v466_v12, 4 }
 0x1bb   :  { %v389_v56 = vadd.f32 %v2599_v51, %v388_v48  ;;  %v463_v48 = vmax.f32 %v461_v29, %v462_v40 }
 0x1bc   :  { %v468_v26 = vmax.f32 %v466_v12, %v467_v19 }
 0x1bd   :  { %v405_v61 = vmax.f32 %v389_v56, 0.0 }
 0x1be   :  { %v469_v34 = vrot.slane %v468_v26, 2 }
 0x1bf   :  { %v2622_v6 = vmul.f32 %v2601_v52, %v405_v61 }
 0x1c0   :  { %v470_v44 = vmax.f32 %v468_v26, %v469_v34 }
 0x1c1   :  { %v473_v14 = vsel %vm296_vm3, %v2622_v6, -inf }
 0x1c2   :  { %v390_v49 = vpop.f32.mrf.mxu2  ;;  %v474_v21 = vrot.slane %v473_v14, 4 }
 0x1c3   :  { %v391_v58 = vadd.f32 %v2599_v51, %v390_v49 }
 0x1c4   :  { %v475_v28 = vmax.f32 %v473_v14, %v474_v21 }
 0x1c5   :  { %v406_v63 = vmax.f32 %v391_v58, 0.0  ;;  %v471_v58 = vrot.slane %v470_v44, 1 }
 0x1c6   :  { %v476_v36 = vrot.slane %v475_v28, 2 }
 0x1c7   :  { %v2628_v8 = vmul.f32 %v2619_v5, %v406_v63  ;;  %v2664_v63 = vpop.permute.xlu1 %448  ;;  %v472_v14 = vmax.f32 %v470_v44, %v471_v58 }
 0x1c8   :  { %v477_v46 = vmax.f32 %v475_v28, %v476_v36 }
 0x1c9   :  { %v480_v17 = vsel %vm296_vm3, %v2628_v8, -inf }
 0x1ca   :  { %v393_v53 = vpop.f32.mrf.mxu2  ;;  %v481_v24 = vrot.slane %v480_v17, 4  ;;  %v478_v61 = vrot.slane %v477_v46, 1 }
 0x1cb   :  { %v394_v59 = vadd.f32 %v2599_v51, %v393_v53 }
 0x1cc   :  { %v482_v30 = vmax.f32 %v480_v17, %v481_v24  ;;  %v479_v17 = vmax.f32 %v477_v46, %v478_v61  ;;  %v582_v61 = vpack.c.bf16 %v2616_v3, %v2625_v7 }
 0x1cd   :  { %v407_v1 = vmax.f32 %v394_v59, 0.0 }
 0x1ce   :  { %v483_v41 = vrot.slane %v482_v30, 2  ;;  %v517_v28 = vpack.c.bf16 %v479_v17, %v479_v17 }
 0x1cf   :  { %v2633_v11 = vmul.f32 %v2604_v55, %v407_v1  ;;  %v464_v1 = vrot.slane %v463_v48, 1 }
 0x1d0   :  { %v484_v49 = vmax.f32 %v482_v30, %v483_v41 }
 0x1d1   :  { %v487_v20 = vsel %vm296_vm3, %v2633_v11, -inf }
 0x1d2   :  { %v395_v2 = vpop.f32.mrf.mxu2  ;;  %v488_v25 = vrot.slane %v487_v20, 4 }
 0x1d3   :  { %v396_v4 = vadd.f32 %v2599_v51, %v395_v2  ;;  %v485_v2 = vrot.slane %v484_v49, 1 }
 0x1d4   :  { %v489_v32 = vmax.f32 %v487_v20, %v488_v25  ;;  %v465_v20 = vmax.f32 %v463_v48, %v464_v1  ;;  %v516_v25 = vpack.c.bf16 %v472_v14, %v472_v14  ;;  %v2356_v1 = vld [vmem:[%s2180_s9] sm:$0xff]  ;;  %s2897_s9 = sld [smem:[%s3069_s0 + %s2472_s6]]  }
 0x1d5   :  { %v408_v9 = vmax.f32 %v396_v4, 0.0  ;;  %v486_v21 = vmax.f32 %v484_v49, %v485_v2  ;;  %710 = vmatpush.bf16.msrb.mxu0 %v2356_v1 }
 0x1d6   :  { %v490_v42 = vrot.slane %v489_v32, 2  ;;  %v515_v30 = vpack.c.bf16 %v465_v20, %v465_v20  ;;  %v538_v34 = vunpack.c.l.b16 %v516_v25 }
 0x1d7   :  { %v2638_v13 = vmul.f32 %v2630_v10, %v408_v9 }
 0x1d8   :  { %v491_v56 = vmax.f32 %v489_v32, %v490_v42  ;;  %v537_v40 = vunpack.c.l.b16 %v515_v30 }
 0x1d9   :  { %v584_v18 = vpack.c.bf16 %v2638_v13, %v2633_v11  ;;  %v494_v22 = vsel %vm296_vm3, %v2638_v13, -inf }
 0x1da   :  { %v495_v27 = vrot.slane %v494_v22, 4  ;;  %v492_v9 = vrot.slane %v491_v56, 1  ;;  %v546_v44 = vsel %vm545_vm4, %v538_v34, %v537_v40 }
 0x1dc   :  { %v496_v35 = vmax.f32 %v494_v22, %v495_v27  ;;  %v493_v24 = vmax.f32 %v491_v56, %v492_v9 }
 0x1de   :  { %v497_v45 = vrot.slane %v496_v35, 2 }
 0x1e0   :  { %v398_v31 = vpop.f32.mrf.mxu2  ;;  %v498_v59 = vmax.f32 %v496_v35, %v497_v45 }
 0x1e1   :  { %v399_v33 = vadd.f32 %v2599_v51, %v398_v31  ;;  %v518_v31 = vpack.c.bf16 %v486_v21, %v486_v21 }
 0x1e2   :  { %v499_v15 = vrot.slane %v498_v59, 1 }
 0x1e3   :  { %v409_v37 = vmax.f32 %v399_v33, 0.0  ;;  %v519_v33 = vpack.c.bf16 %v493_v24, %v493_v24  ;;  %v540_v41 = vunpack.c.l.b16 %v518_v31 }
 0x1e4   :  { %v500_v26 = vmax.f32 %v498_v59, %v499_v15 }
 0x1e5   :  { %v2659_v43 = vmul.f32 %v2656_v39, %v409_v37  ;;  %v539_v37 = vunpack.c.l.b16 %v517_v28 }
 0x1e6   :  { %v520_v35 = vpack.c.bf16 %v500_v26, %v500_v26 }
 0x1e7   :  { %v501_v47 = vsel %vm296_vm3, %v2659_v43, -inf  ;;  %v548_v48 = vsel %vm547_vm5, %v539_v37, %v546_v44 }
 0x1e8   :  { %v502_v53 = vrot.slane %v501_v47, 4  ;;  %v400_v54 = vpop.f32.mrf.mxu2  ;;  %v542_v45 = vunpack.c.l.b16 %v520_v35 }
 0x1e9   :  { %v401_v57 = vadd.f32 %v2599_v51, %v400_v54 }
 0x1ea   :  { %v503_v60 = vmax.f32 %v501_v47, %v502_v53  ;;  %v550_v53 = vsel %vm549_vm6, %v540_v41, %v548_v48 }
 0x1eb   :  { %v410_v62 = vmax.f32 %v401_v57, 0.0 }
 0x1ec   :  { %v504_v4 = vrot.slane %v503_v60, 2 }
 0x1ed   :  { %v458_v12 = vmul.f32 %v2664_v63, %v410_v62  ;;  %v583_v62 = vpack.c.bf16 %v2628_v8, %v2622_v6  ;;  %v2426_v6 = vld [vmem:[%s2594_s27] ss:$0 sm:$0xff]  ;;  %s2874_s27 = sld [smem:[%s3069_s0 + %s2469_s24]]  }
 0x1ee   :  { %v505_v16 = vmax.f32 %v503_v60, %v504_v4 }
 0x1ef   :  { %v508_v19 = vsel %vm296_vm3, %v458_v12, -inf  ;;  %v585_v51 = vpack.c.bf16 %v458_v12, %v2659_v43  ;;  %v541_v43 = vunpack.c.l.b16 %v519_v33 }
 0x1f0   :  { %v506_v22 = vrot.slane %v505_v16, 1  ;;  %v509_v23 = vrot.slane %v508_v19, 4 }
 0x1f1   :  { %v552_v54 = vsel %vm551_vm7, %v541_v43, %v550_v53 }
 0x1f2   :  { %v510_v27 = vmax.f32 %v508_v19, %v509_v23  ;;  %v507_v29 = vmax.f32 %v505_v16, %v506_v22  ;;  %v554_v57 = vsel %vm553_vm8, %v542_v45, %v552_v54 }
 0x1f4   :  { %v511_v32 = vrot.slane %v510_v27, 2  ;;  %v521_v38 = vpack.c.bf16 %v507_v29, %v507_v29 }
 0x1f6   :  { %v512_v36 = vmax.f32 %v510_v27, %v511_v32  ;;  %v543_v47 = vunpack.c.l.b16 %v521_v38 }
 0x1f8   :  { %v513_v42 = vrot.slane %v512_v36, 1  ;;  %v556_v58 = vsel %vm555_vm9, %v543_v47, %v554_v57 }
 0x1fa   :  { %v514_v46 = vmax.f32 %v512_v36, %v513_v42 }
 0x1fc   :  { %v522_v49 = vpack.c.bf16 %v514_v46, %v514_v46 }
 0x1fe   :  { %v544_v56 = vunpack.c.l.b16 %v522_v49 }
 0x200   :  { %v558_v59 = vsel %vm557_vm10, %v544_v56, %v556_v58  ;;  %v2357_v58 = vld [vmem:[%s2182_s17] sm:$0xff]  ;;  %s2198_s17 = sld [smem:[%s3069_s0 + %s2474_s14]]  }
 0x201   :  { %v559_v60 = vpack.c.b16 %v558_v59, %v558_v59  ;;  %858 = vmatpush.bf16.msrb.mxu1 %v2357_v58 }
 0x203   :  { %2243 = vmatmul.msk.bf16.vlgmr.msra.gmra.mxu3 %vm296_vm3, %v559_v60  ;;  %v2705_v60 = vld [vmem:[%s2694_s13] ss:$0 sm:$0xff]  ;;  %s2196_s13 = sld [smem:[%s3069_s0 + %s2473_s10]]  }
 0x213   :  { %2248 = vmatmul.msk.bf16.vlgmr.msrb.gmra.mxu3 %vm296_vm3, %v582_v61 }
 0x223   :  { %2249 = vmatmul.msk.bf16.gmra.mxu3 %vm296_vm3, %v583_v62 }
 0x233   :  { %2250 = vmatmul.msk.bf16.gmra.mxu3 %vm296_vm3, %v584_v18 }
 0x243   :  { %2251 = vmatmul.msk.bf16.gmra.mxu3 %vm296_vm3, %v585_v51 }
 0x286   :  { %v578_v3 = vpop.f32.mrf.mxu3 }
 0x287   :  { %v579_v8 = vadd.f32 %v2426_v6, %v578_v3 }
 0x289   :  { %v636_v4 = vrot.slane %v579_v8, 1  ;;  %v643_v9 = vperm.slane %v579_v8, 0  ;;  %v637_v19 = vrot.slane %v579_v8, 2  ;;  %v638_v51 = vrot.slane %v579_v8, 3 }
 0x28a   :  { %v639_v29 = vrot.slane %v579_v8, 4  ;;  %v640_v30 = vrot.slane %v579_v8, 5  ;;  %v641_v41 = vrot.slane %v579_v8, 6  ;;  %v642_v42 = vrot.slane %v579_v8, 7 }
 0x28b   :  { %v644_v14 = vperm.slane %v636_v4, 0  ;;  %v645_v20 = vperm.slane %v637_v19, 0  ;;  %v646_v22 = vperm.slane %v638_v51, 0 }
 0x28c   :  { %v647_v31 = vperm.slane %v639_v29, 0  ;;  %v648_v33 = vperm.slane %v640_v30, 0  ;;  %v649_v43 = vperm.slane %v641_v41, 0  ;;  %v650_v45 = vperm.slane %v642_v42, 0 }
 0x28e   :  { %v580_v7 = vpop.f32.mrf.mxu3 }
 0x296   :  { %v615_v2 = vpop.f32.mrf.mxu3 }
 0x297   :  { %v659_v12 = vadd.f32 %v643_v9, %v615_v2 }
 0x299   :  { %v667_v18 = vmax.f32 %v659_v12, 0.0 }
 0x29e   :  { %v617_v11 = vpop.f32.mrf.mxu3 }
 0x29f   :  { %v660_v13 = vadd.f32 %v644_v14, %v617_v11 }
 0x2a1   :  { %v668_v15 = vmax.f32 %v660_v13, 0.0 }
 0x2a3   :  { %v675_v16 = vpack.c.bf16 %v668_v15, %v667_v18 }
 0x2a5   :  { %2256 = vmatmul.msk.bf16.vlgmr.msrb.gmra.mxu0 %vm296_vm3, %v675_v16 }
 0x2a6   :  { %v620_v17 = vpop.f32.mrf.mxu3 }
 0x2a7   :  { %v661_v21 = vadd.f32 %v645_v20, %v620_v17 }
 0x2a9   :  { %v669_v25 = vmax.f32 %v661_v21, 0.0 }
 0x2ae   :  { %v622_v23 = vpop.f32.mrf.mxu3 }
 0x2af   :  { %v662_v24 = vadd.f32 %v646_v22, %v622_v23 }
 0x2b1   :  { %v670_v26 = vmax.f32 %v662_v24, 0.0 }
 0x2b3   :  { %v676_v27 = vpack.c.bf16 %v670_v26, %v669_v25 }
 0x2b5   :  { %2257 = vmatmul.msk.bf16.gmra.mxu0 %vm296_vm3, %v676_v27 }
 0x2b6   :  { %v625_v28 = vpop.f32.mrf.mxu3 }
 0x2b7   :  { %v663_v32 = vadd.f32 %v647_v31, %v625_v28 }
 0x2b9   :  { %v671_v36 = vmax.f32 %v663_v32, 0.0 }
 0x2be   :  { %v627_v34 = vpop.f32.mrf.mxu3 }
 0x2bf   :  { %v664_v35 = vadd.f32 %v648_v33, %v627_v34 }
 0x2c1   :  { %v672_v37 = vmax.f32 %v664_v35, 0.0 }
 0x2c3   :  { %v677_v38 = vpack.c.bf16 %v672_v37, %v671_v36 }
 0x2c5   :  { %2258 = vmatmul.msk.bf16.gmra.mxu0 %vm296_vm3, %v677_v38  ;;  %v938_v38 = vld [vmem:[%s2726_s21 + $0x8] sm:$0xf] }
 0x2c6   :  { %v630_v40 = vpop.f32.mrf.mxu3  ;;  %v948_v42 = vunpack.c.l.b16 %v938_v38 }
 0x2c7   :  { %v665_v44 = vadd.f32 %v649_v43, %v630_v40 }
 0x2c9   :  { %v673_v48 = vmax.f32 %v665_v44, 0.0 }
 0x2ce   :  { %v632_v46 = vpop.f32.mrf.mxu3 }
 0x2cf   :  { %v666_v47 = vadd.f32 %v650_v45, %v632_v46  ;;  %v950_v46 = vpack.c.b16 %v948_v42, %v948_v42 }
 0x2d1   :  { %v674_v49 = vmax.f32 %v666_v47, 0.0 }
 0x2d3   :  { %v678_v53 = vpack.c.bf16 %v674_v49, %v673_v48 }
 0x2d5   :  { %2259 = vmatmul.msk.bf16.gmra.mxu0 %vm296_vm3, %v678_v53 }
 0x322   :  { %v712_v54 = vpop.f32.mrf.mxu0 }
 0x323   :  { %v713_v1 = vadd.f32 %v2705_v60, %v712_v54 }
 0x325   :  { %v732_v2 = vmax.f32 %v713_v1, 0.0 }
 0x327   :  { %v740_v13 = vmul.f32 %v732_v2, %v2596_v50 }
 0x329   :  { %v748_v51 = vsel %vm296_vm3, %v740_v13, -inf }
 0x32a   :  { %v714_v56 = vpop.f32.mrf.mxu0 }
 0x32b   :  { %v715_v61 = vadd.f32 %v2705_v60, %v714_v56 }
 0x32d   :  { %v733_v7 = vmax.f32 %v715_v61, 0.0 }
 0x32f   :  { %v741_v12 = vmul.f32 %v733_v7, %v2613_v0 }
 0x331   :  { %v755_v16 = vsel %vm296_vm3, %v741_v12, -inf }
 0x332   :  { %v717_v57 = vpop.f32.mrf.mxu0  ;;  %v756_v21 = vrot.slane %v755_v16, 4 }
 0x333   :  { %v718_v62 = vadd.f32 %v2705_v60, %v717_v57  ;;  %v973_v57 = vsel %vm971_vm11, %v950_v46, 0 }
 0x334   :  { %v757_v25 = vmax.f32 %v755_v16, %v756_v21  ;;  %981 = vmatpush.bf16.msra.mxu1 %v973_v57  ;;  %v910_v57 = vld [vmem:[%s2186_s29 + $0x30] sm:$0xff] }
 0x335   :  { %v734_v6 = vmax.f32 %v718_v62, 0.0 }
 0x336   :  { %v758_v34 = vrot.slane %v757_v25, 2 }
 0x337   :  { %v742_v11 = vmul.f32 %v734_v6, %v2601_v52 }
 0x338   :  { %v759_v44 = vmax.f32 %v757_v25, %v758_v34 }
 0x339   :  { %v762_v17 = vsel %vm296_vm3, %v742_v11, -inf }
 0x33a   :  { %v719_v59 = vpop.f32.mrf.mxu0  ;;  %v763_v22 = vrot.slane %v762_v17, 4  ;;  %v760_v61 = vrot.slane %v759_v44, 1 }
 0x33b   :  { %v720_v3 = vadd.f32 %v2705_v60, %v719_v59  ;;  %v2359_v59 = vld [vmem:[%s2726_s21] sm:$0xff]  ;;  %s2961_s21 = sld [smem:[%s3069_s0 + %s2475_s18]]  }
 0x33c   :  { %v764_v26 = vmax.f32 %v762_v17, %v763_v22  ;;  %982 = vmatpush.bf16.msra.mxu1 %v2359_v59  ;;  %v761_v12 = vmax.f32 %v759_v44, %v760_v61  ;;  %v904_v44 = vld [vmem:[%s2186_s29] sm:$0xff]  ;;  %v913_v61 = vld [vmem:[%s2186_s29 + $0x48] sm:$0xff] }
 0x33d   :  { %v735_v4 = vmax.f32 %v720_v3, 0.0  ;;  %v912_v59 = vld [vmem:[%s2186_s29 + $0x40] sm:$0xff] }
 0x33e   :  { %v765_v36 = vrot.slane %v764_v26, 2 }
 0x33f   :  { %v743_v18 = vmul.f32 %v735_v4, %v2619_v5 }
 0x340   :  { %v766_v47 = vmax.f32 %v764_v26, %v765_v36 }
 0x341   :  { %v769_v20 = vsel %vm296_vm3, %v743_v18, -inf }
 0x342   :  { %v722_v8 = vpop.f32.mrf.mxu0  ;;  %v770_v5 = vrot.slane %v769_v20, 4  ;;  %v767_v3 = vrot.slane %v766_v47, 1 }
 0x343   :  { %v723_v9 = vadd.f32 %v2705_v60, %v722_v8 }
 0x344   :  { %v771_v29 = vmax.f32 %v769_v20, %v770_v5  ;;  %v768_v13 = vmax.f32 %v766_v47, %v767_v3  ;;  %v906_v47 = vld [vmem:[%s2186_s29 + $0x10] sm:$0xff]  ;;  %v915_v3 = vld [vmem:[%s2186_s29 + $0x58] sm:$0xff] }
 0x345   :  { %v736_v14 = vmax.f32 %v723_v9, 0.0 }
 0x346   :  { %v772_v41 = vrot.slane %v771_v29, 2  ;;  %v806_v21 = vpack.c.bf16 %v768_v13, %v768_v13  ;;  %v2779_v13 = vld [vmem:[%s2757_s3] ss:$0 sm:$0xff] }
 0x347   :  { %v744_v15 = vmul.f32 %v736_v14, %v2604_v55  ;;  %v749_v55 = vrot.slane %v748_v51, 4 }
 0x348   :  { %v773_v53 = vmax.f32 %v771_v29, %v772_v41  ;;  %v828_v25 = vunpack.c.l.b16 %v806_v21 }
 0x349   :  { %v776_v52 = vsel %vm296_vm3, %v744_v15, -inf  ;;  %v750_v28 = vmax.f32 %v748_v51, %v749_v55  ;;  %v805_v51 = vpack.c.bf16 %v761_v12, %v761_v12 }
 0x34a   :  { %v724_v19 = vpop.f32.mrf.mxu0  ;;  %v777_v23 = vrot.slane %v776_v52, 4  ;;  %v774_v8 = vrot.slane %v773_v53, 1 }
 0x34b   :  { %v725_v0 = vadd.f32 %v2705_v60, %v724_v19  ;;  %v751_v40 = vrot.slane %v750_v28, 2  ;;  %v827_v5 = vunpack.c.l.b16 %v805_v51 }
 0x34c   :  { %v778_v32 = vmax.f32 %v776_v52, %v777_v23  ;;  %v775_v15 = vmax.f32 %v773_v53, %v774_v8  ;;  %v908_v53 = vld [vmem:[%s2186_s29 + $0x20] sm:$0xff] }
 0x34d   :  { %v737_v50 = vmax.f32 %v725_v0, 0.0  ;;  %v752_v49 = vmax.f32 %v750_v28, %v751_v40  ;;  %v2428_v8 = vld [vmem:[%s2736_s25] ss:$0 sm:$0xff]  ;;  %s2203_s25 = sld [smem:[%s3069_s0 + %s2476_s22]]  }
 0x34f   :  { %v745_v24 = vmul.f32 %v737_v50, %v2630_v10  ;;  %v779_v10 = vrot.slane %v778_v32, 2  ;;  %v753_v6 = vrot.slane %v752_v49, 1  ;;  %v807_v50 = vpack.c.bf16 %v775_v15, %v775_v15 }
 0x351   :  { %v783_v27 = vsel %vm296_vm3, %v745_v24, -inf  ;;  %v754_v18 = vmax.f32 %v752_v49, %v753_v6  ;;  %v829_v28 = vunpack.c.l.b16 %v807_v50  ;;  %v2358_v6 = vld [vmem:[%s2184_s7] sm:$0xff] }
 0x352   :  { %v784_v30 = vrot.slane %v783_v27, 4  ;;  %v727_v31 = vpop.f32.mrf.mxu0  ;;  %888 = vmatpush.bf16.msra.mxu2 %v2358_v6 }
 0x353   :  { %v728_v33 = vadd.f32 %v2705_v60, %v727_v31  ;;  %v804_v22 = vpack.c.bf16 %v754_v18, %v754_v18 }
 0x354   :  { %v785_v35 = vmax.f32 %v783_v27, %v784_v30 }
 0x355   :  { %v738_v37 = vmax.f32 %v728_v33, 0.0  ;;  %v826_v27 = vunpack.c.l.b16 %v804_v22  ;;  %v2787_v22 = vpop.permute.xlu0 %1033 }
 0x356   :  { %v786_v45 = vrot.slane %v785_v35, 2 }
 0x357   :  { %v746_v43 = vmul.f32 %v738_v37, %v2656_v39  ;;  %v780_v39 = vmax.f32 %v778_v32, %v779_v10  ;;  %v834_v31 = vsel %vm545_vm4, %v827_v5, %v826_v27 }
 0x358   :  { %v787_v62 = vmax.f32 %v785_v35, %v786_v45  ;;  %v835_v34 = vsel %vm547_vm5, %v828_v25, %v834_v31  ;;  %v905_v45 = vld [vmem:[%s2186_s29 + $0x8] sm:$0xff] }
 0x359   :  { %v790_v48 = vsel %vm296_vm3, %v746_v43, -inf  ;;  %v781_v4 = vrot.slane %v780_v39, 1  ;;  %v836_v36 = vsel %vm549_vm6, %v829_v28, %v835_v34  ;;  %v930_v46 = vpack.c.bf16 %v905_v45, %v904_v44 }
 0x35a   :  { %v791_v54 = vrot.slane %v790_v48, 4  ;;  %v729_v56 = vpop.f32.mrf.mxu0  ;;  %v788_v14 = vrot.slane %v787_v62, 1 }
 0x35b   :  { %v730_v58 = vadd.f32 %v2705_v60, %v729_v56  ;;  %v782_v19 = vmax.f32 %v780_v39, %v781_v4  ;;  %v911_v39 = vld [vmem:[%s2186_s29 + $0x38] sm:$0xff] }
 0x35c   :  { %v792_v1 = vmax.f32 %v790_v48, %v791_v54  ;;  %v789_v20 = vmax.f32 %v787_v62, %v788_v14  ;;  %v907_v48 = vld [vmem:[%s2186_s29 + $0x18] sm:$0xff]  ;;  %v909_v54 = vld [vmem:[%s2186_s29 + $0x28] sm:$0xff]  ;;  %v934_v62 = vpack.c.bf16 %v913_v61, %v912_v59 }
 0x35d   :  { %v739_v7 = vmax.f32 %v730_v58, 0.0  ;;  %v808_v55 = vpack.c.bf16 %v782_v19, %v782_v19  ;;  %v931_v49 = vpack.c.bf16 %v907_v48, %v906_v47  ;;  %v932_v56 = vpack.c.bf16 %v909_v54, %v908_v53  ;;  %v2805_v53 = vpop.permute.xlu0 %1048 }
 0x35e   :  { %v793_v2 = vrot.slane %v792_v1, 2  ;;  %v809_v23 = vpack.c.bf16 %v789_v20, %v789_v20  ;;  %v933_v58 = vpack.c.bf16 %v911_v39, %v910_v57 }
 0x35f   :  { %v747_v9 = vmul.f32 %v739_v7, %v2664_v63  ;;  %v830_v30 = vunpack.c.l.b16 %v808_v55 }
 0x360   :  { %v794_v11 = vmax.f32 %v792_v1, %v793_v2  ;;  %v831_v32 = vunpack.c.l.b16 %v809_v23  ;;  %v914_v1 = vld [vmem:[%s2186_s29 + $0x50] sm:$0xff]  ;;  %v2361_v2 = vld [vmem:[%s2191_s11] sm:$0xff] }
 0x361   :  { %v797_v60 = vsel %vm296_vm3, %v747_v9, -inf  ;;  %v837_v38 = vsel %vm551_vm7, %v830_v30, %v836_v36  ;;  %v935_v7 = vpack.c.bf16 %v915_v3, %v914_v1  ;;  %1297 = vmatpush.bf16.msra.mxu3 %v2361_v2 }
 0x362   :  { %v795_v16 = vrot.slane %v794_v11, 1  ;;  %v798_v17 = vrot.slane %v797_v60, 4  ;;  %v838_v41 = vsel %vm553_vm8, %v831_v32, %v837_v38 }
 0x364   :  { %v799_v0 = vmax.f32 %v797_v60, %v798_v17  ;;  %v796_v52 = vmax.f32 %v794_v11, %v795_v16  ;;  %v2782_v16 = vpop.permute.xlu2 %1028 }
 0x365   :  { %v2813_v3 = vpop.permute.xlu0 %1073 }
 0x366   :  { %v800_v63 = vrot.slane %v799_v0, 2  ;;  %v810_v26 = vpack.c.bf16 %v796_v52, %v796_v52 }
 0x368   :  { %v801_v24 = vmax.f32 %v799_v0, %v800_v63  ;;  %v832_v35 = vunpack.c.l.b16 %v810_v26 }
 0x36a   :  { %v802_v29 = vrot.slane %v801_v24, 1  ;;  %v839_v42 = vsel %vm555_vm9, %v832_v35, %v838_v41 }
 0x36c   :  { %v803_v33 = vmax.f32 %v801_v24, %v802_v29  ;;  %v2796_v41 = vpop.permute.xlu2 %1043 }
 0x36e   :  { %v811_v37 = vpack.c.bf16 %v803_v33, %v803_v33 }
 0x370   :  { %v833_v40 = vunpack.c.l.b16 %v811_v37 }
 0x372   :  { %v840_v10 = vsel %vm557_vm10, %v833_v40, %v839_v42  ;;  %v2794_v40 = vpop.permute.xlu1 %1038 }
 0x373   :  { %v841_v43 = vpack.c.b16 %v840_v10, %v840_v10 }
 0x375   :  { %2264 = vmatmul.msk.bf16.vlgmr.msrb.gmra.mxu1 %vm296_vm3, %v841_v43 }
 0x385   :  { %2274 = vmatmul.msk.bf16.vlgmr.msra.gmra.mxu1 %vm952_vm12, %v930_v46 }
 0x395   :  { %2275 = vmatmul.msk.bf16.gmra.mxu1 %vm952_vm12, %v931_v49 }
 0x3a5   :  { %2276 = vmatmul.msk.bf16.gmra.mxu1 %vm952_vm12, %v932_v56 }
 0x3b5   :  { %2277 = vmatmul.msk.bf16.gmra.mxu1 %vm952_vm12, %v933_v58  ;;  %v2808_v58 = vpop.permute.xlu1 %1053 }
 0x3c5   :  { %2278 = vmatmul.msk.bf16.gmra.mxu1 %vm952_vm12, %v934_v62 }
 0x3d5   :  { %2279 = vmatmul.msk.bf16.gmra.mxu1 %vm952_vm12, %v935_v7 }
 0x3f2   :  { %v860_v4 = vpop.f32.mrf.mxu1 }
 0x3f3   :  { %v861_v9 = vadd.f32 %v2428_v8, %v860_v4 }
 0x3f5   :  { %v864_v12 = vmax.f32 %v861_v9, 0.0  ;;  %v2817_v9 = vpop.permute.xlu1 %1058 }
 0x3f7   :  { %v865_v14 = vpack.c.bf16 %v864_v12, %v864_v12  ;;  %v2819_v12 = vpop.permute.xlu0 %1063 }
 0x3f9   :  { %2269 = vmatmul.msk.bf16.vlgmr.msra.gmra.mxu2 %vm296_vm3, %v865_v14 }
 0x3fa   :  { %v862_v11 = vpop.f32.mrf.mxu1 }
 0x402   :  { %v984_v60 = vpop.f32.mrf.mxu1 }
 0x403   :  { %v985_v18 = vadd.f32 %v2779_v13, %v984_v60 }
 0x405   :  { %v1014_v15 = vmax.f32 %v985_v18, 0.0 }
 0x407   :  { %v1086_v17 = vmul.f32 %v2782_v16, %v1014_v15 }
 0x409   :  { %v1098_v19 = vsel %vm296_vm3, %v1086_v17, -inf }
 0x40a   :  { %v1099_v51 = vrot.slane %v1098_v19, 4  ;;  %v986_v20 = vpop.f32.mrf.mxu1 }
 0x40b   :  { %v987_v0 = vadd.f32 %v2779_v13, %v986_v20 }
 0x40c   :  { %v1100_v21 = vmax.f32 %v1098_v19, %v1099_v51  ;;  %v2829_v51 = vpop.permute.xlu2 %1068 }
 0x40d   :  { %v1015_v52 = vmax.f32 %v987_v0, 0.0 }
 0x40e   :  { %v1101_v50 = vrot.slane %v1100_v21, 2 }
 0x40f   :  { %v1087_v63 = vmul.f32 %v2787_v22, %v1015_v52 }
 0x410   :  { %v1102_v55 = vmax.f32 %v1100_v21, %v1101_v50 }
 0x411   :  { %v1105_v5 = vsel %vm296_vm3, %v1087_v63, -inf  ;;  %v1258_v23 = vpack.c.bf16 %v1087_v63, %v1086_v17 }
 0x412   :  { %v1106_v24 = vrot.slane %v1105_v5, 4  ;;  %v989_v25 = vpop.f32.mrf.mxu1  ;;  %v1103_v26 = vrot.slane %v1102_v55, 1 }
 0x413   :  { %2289 = vmatmul.msk.bf16.vlgmr.msra.gmra.mxu3 %vm296_vm3, %v1258_v23  ;;  %v990_v29 = vadd.f32 %v2779_v13, %v989_v25 }
 0x414   :  { %v1107_v27 = vmax.f32 %v1105_v5, %v1106_v24  ;;  %v1104_v30 = vmax.f32 %v1102_v55, %v1103_v26 }
 0x415   :  { %v1016_v34 = vmax.f32 %v990_v29, 0.0 }
 0x416   :  { %v1108_v28 = vrot.slane %v1107_v27, 2  ;;  %v1182_v36 = vpack.c.bf16 %v1104_v30, %v1104_v30 }
 0x417   :  { %v1088_v10 = vmul.f32 %v2794_v40, %v1016_v34 }
 0x418   :  { %v1109_v31 = vmax.f32 %v1107_v27, %v1108_v28  ;;  %v1212_v44 = vunpack.c.l.b16 %v1182_v36 }
 0x419   :  { %v1112_v19 = vsel %vm296_vm3, %v1088_v10, -inf }
 0x41a   :  { %v1110_v32 = vrot.slane %v1109_v31, 1  ;;  %v991_v33 = vpop.f32.mrf.mxu1  ;;  %v1113_v50 = vrot.slane %v1112_v19, 4 }
 0x41b   :  { %v992_v35 = vadd.f32 %v2779_v13, %v991_v33 }
 0x41c   :  { %v1111_v37 = vmax.f32 %v1109_v31, %v1110_v32  ;;  %v1114_v29 = vmax.f32 %v1112_v19, %v1113_v50  ;;  %v2360_v31 = vld [vmem:[%s2192_s19] sm:$0xff] }
 0x41d   :  { %v1017_v38 = vmax.f32 %v992_v35, 0.0  ;;  %1251 = vmatpush.bf16.msrb.mxu2 %v2360_v31 }
 0x41e   :  { %v1183_v42 = vpack.c.bf16 %v1111_v37, %v1111_v37 }
 0x41f   :  { %v1089_v43 = vmul.f32 %v2796_v41, %v1017_v38 }
 0x420   :  { %v1213_v45 = vunpack.c.l.b16 %v1183_v42 }
 0x421   :  { %v1259_v46 = vpack.c.bf16 %v1089_v43, %v1088_v10  ;;  %v1119_v20 = vsel %vm296_vm3, %v1089_v43, -inf }
 0x422   :  { %v2801_v47 = vsel %vm545_vm4, %v1213_v45, %v1212_v44  ;;  %v994_v48 = vpop.f32.mrf.mxu1  ;;  %v1120_v55 = vrot.slane %v1119_v20, 4  ;;  %v1115_v44 = vrot.slane %v1114_v29, 2 }
 0x423   :  { %2290 = vmatmul.msk.bf16.gmra.mxu3 %vm296_vm3, %v1259_v46  ;;  %v995_v49 = vadd.f32 %v2779_v13, %v994_v48 }
 0x424   :  { %v1121_v32 = vmax.f32 %v1119_v20, %v1120_v55 }
 0x425   :  { %v1018_v56 = vmax.f32 %v995_v49, 0.0 }
 0x426   :  { %v1122_v48 = vrot.slane %v1121_v32, 2 }
 0x427   :  { %v1090_v59 = vmul.f32 %v2805_v53, %v1018_v56  ;;  %v2843_v56 = vpop.permute.xlu2 %1078 }
 0x429   :  { %v1126_v63 = vsel %vm296_vm3, %v1090_v59, -inf }
 0x42a   :  { %v996_v54 = vpop.f32.mrf.mxu1  ;;  %v1127_v25 = vrot.slane %v1126_v63, 4 }
 0x42b   :  { %v997_v57 = vadd.f32 %v2779_v13, %v996_v54 }
 0x42c   :  { %v1128_v10 = vmax.f32 %v1126_v63, %v1127_v25  ;;  %v2848_v63 = vpop.permute.xlu1 %1083 }
 0x42d   :  { %v1019_v39 = vmax.f32 %v997_v57, 0.0 }
 0x42f   :  { %v1091_v61 = vmul.f32 %v2808_v58, %v1019_v39 }
 0x431   :  { %v1260_v62 = vpack.c.bf16 %v1091_v61, %v1090_v59  ;;  %v1133_v5 = vsel %vm296_vm3, %v1091_v61, -inf  ;;  %v1129_v59 = vrot.slane %v1128_v10, 2 }
 0x432   :  { %v999_v1 = vpop.f32.mrf.mxu1  ;;  %v1134_v30 = vrot.slane %v1133_v5, 4 }
 0x433   :  { %2291 = vmatmul.msk.bf16.gmra.mxu3 %vm296_vm3, %v1260_v62  ;;  %v1000_v7 = vadd.f32 %v2779_v13, %v999_v1  ;;  %v1116_v62 = vmax.f32 %v1114_v29, %v1115_v44 }
 0x434   :  { %v1135_v45 = vmax.f32 %v1133_v5, %v1134_v30 }
 0x435   :  { %v1020_v8 = vmax.f32 %v1000_v7, 0.0 }
 0x436   :  { %v1136_v1 = vrot.slane %v1135_v45, 2 }
 0x437   :  { %v1092_v14 = vmul.f32 %v2817_v9, %v1020_v8 }
 0x438   :  { %v1137_v19 = vmax.f32 %v1135_v45, %v1136_v1 }
 0x439   :  { %v1140_v24 = vsel %vm296_vm3, %v1092_v14, -inf }
 0x43a   :  { %v1001_v6 = vpop.f32.mrf.mxu1  ;;  %v1141_v33 = vrot.slane %v1140_v24, 4 }
 0x43b   :  { %v1002_v2 = vadd.f32 %v2779_v13, %v1001_v6  ;;  %v1123_v6 = vmax.f32 %v1121_v32, %v1122_v48 }
 0x43c   :  { %v1142_v49 = vmax.f32 %v1140_v24, %v1141_v33 }
 0x43d   :  { %v1021_v4 = vmax.f32 %v1002_v2, 0.0 }
 0x43e   :  { %v1143_v8 = vrot.slane %v1142_v49, 2 }
 0x43f   :  { %v1093_v11 = vmul.f32 %v2819_v12, %v1021_v4 }
 0x441   :  { %v1261_v60 = vpack.c.bf16 %v1093_v11, %v1092_v14  ;;  %v1147_v26 = vsel %vm296_vm3, %v1093_v11, -inf }
 0x442   :  { %v1004_v18 = vpop.f32.mrf.mxu1  ;;  %v1148_v36 = vrot.slane %v1147_v26, 4 }
 0x443   :  { %v1005_v15 = vadd.f32 %v2779_v13, %v1004_v18  ;;  %2292 = vmatmul.msk.bf16.gmra.mxu3 %vm296_vm3, %v1261_v60  ;;  %v1130_v18 = vmax.f32 %v1128_v10, %v1129_v59 }
 0x444   :  { %v1149_v57 = vmax.f32 %v1147_v26, %v1148_v36 }
 0x445   :  { %v1022_v17 = vmax.f32 %v1005_v15, 0.0  ;;  %v1131_v24 = vrot.slane %v1130_v18, 1 }
 0x446   :  { %v1150_v4 = vrot.slane %v1149_v57, 2 }
 0x447   :  { %v1094_v21 = vmul.f32 %v2829_v51, %v1022_v17  ;;  %v1117_v17 = vrot.slane %v1116_v62, 1 }
 0x448   :  { %v1151_v55 = vmax.f32 %v1149_v57, %v1150_v4 }
 0x449   :  { %v1154_v27 = vsel %vm296_vm3, %v1094_v21, -inf  ;;  %v1118_v26 = vmax.f32 %v1116_v62, %v1117_v17 }
 0x44a   :  { %v1006_v0 = vpop.f32.mrf.mxu1  ;;  %v1155_v37 = vrot.slane %v1154_v27, 4  ;;  %v1152_v33 = vrot.slane %v1151_v55, 1 }
 0x44b   :  { %v1007_v52 = vadd.f32 %v2779_v13, %v1006_v0 }
 0x44c   :  { %v1156_v39 = vmax.f32 %v1154_v27, %v1155_v37  ;;  %v1138_v27 = vrot.slane %v1137_v19, 1  ;;  %v1132_v37 = vmax.f32 %v1130_v18, %v1131_v24  ;;  %v1153_v48 = vmax.f32 %v1151_v55, %v1152_v33 }
 0x44d   :  { %v1023_v23 = vmax.f32 %v1007_v52, 0.0  ;;  %v1144_v52 = vmax.f32 %v1142_v49, %v1143_v8 }
 0x44e   :  { %v1157_v14 = vrot.slane %v1156_v39, 2  ;;  %v1186_v57 = vpack.c.bf16 %v1132_v37, %v1132_v37 }
 0x44f   :  { %v1095_v28 = vmul.f32 %v2813_v3, %v1023_v23  ;;  %v1145_v30 = vrot.slane %v1144_v52, 1 }
 0x450   :  { %v1158_v5 = vmax.f32 %v1156_v39, %v1157_v14 }
 0x451   :  { %v1161_v34 = vsel %vm296_vm3, %v1095_v28, -inf  ;;  %v1262_v35 = vpack.c.bf16 %v1095_v28, %v1094_v21  ;;  %v1124_v21 = vrot.slane %v1123_v6, 1  ;;  %v1146_v44 = vmax.f32 %v1144_v52, %v1145_v30 }
 0x452   :  { %v1162_v38 = vrot.slane %v1161_v34, 4  ;;  %v1009_v42 = vpop.f32.mrf.mxu1 }
 0x453   :  { %v1010_v43 = vadd.f32 %v2779_v13, %v1009_v42  ;;  %2293 = vmatmul.msk.bf16.gmra.mxu3 %vm296_vm3, %v1262_v35  ;;  %v1188_v1 = vpack.c.bf16 %v1146_v44, %v1146_v44 }
 0x454   :  { %v1163_v46 = vmax.f32 %v1161_v34, %v1162_v38  ;;  %v1159_v34 = vrot.slane %v1158_v5, 1  ;;  %v1139_v38 = vmax.f32 %v1137_v19, %v1138_v27 }
 0x455   :  { %v1024_v54 = vmax.f32 %v1010_v43, 0.0  ;;  %v1184_v43 = vpack.c.bf16 %v1118_v26, %v1118_v26  ;;  %v1218_v19 = vunpack.c.l.b16 %v1188_v1 }
 0x456   :  { %v1164_v7 = vrot.slane %v1163_v46, 2  ;;  %v1160_v49 = vmax.f32 %v1158_v5, %v1159_v34  ;;  %v1187_v39 = vpack.c.bf16 %v1139_v38, %v1139_v38 }
 0x457   :  { %v1096_v61 = vmul.f32 %v2843_v56, %v1024_v54  ;;  %v1214_v62 = vunpack.c.l.b16 %v1184_v43 }
 0x458   :  { %v1165_v20 = vmax.f32 %v1163_v46, %v1164_v7  ;;  %v1190_v4 = vpack.c.bf16 %v1160_v49, %v1160_v49 }
 0x459   :  { %v1168_v2 = vsel %vm296_vm3, %v1096_v61, -inf  ;;  %v1225_v17 = vsel %vm547_vm5, %v1214_v62, %v2801_v47 }
 0x45a   :  { %v1169_v11 = vrot.slane %v1168_v2, 4  ;;  %v1011_v60 = vpop.f32.mrf.mxu1  ;;  %v1166_v28 = vrot.slane %v1165_v20, 1  ;;  %v1220_v52 = vunpack.c.l.b16 %v1190_v4 }
 0x45b   :  { %v1012_v15 = vadd.f32 %v2779_v13, %v1011_v60  ;;  %v1125_v13 = vmax.f32 %v1123_v6, %v1124_v21  ;;  %v2853_v6 = vpop.permute.xlu2 %1769  ;;  %v1217_v60 = vunpack.c.l.b16 %v1187_v39 }
 0x45c   :  { %v1170_v0 = vmax.f32 %v1168_v2, %v1169_v11  ;;  %v1167_v42 = vmax.f32 %v1165_v20, %v1166_v28  ;;  %v1189_v2 = vpack.c.bf16 %v1153_v48, %v1153_v48  ;;  %v1216_v11 = vunpack.c.l.b16 %v1186_v57 }
 0x45d   :  { %v1025_v50 = vmax.f32 %v1012_v15, 0.0  ;;  %v1185_v46 = vpack.c.bf16 %v1125_v13, %v1125_v13  ;;  %v2430_v13 = vld [vmem:[%s2775_s15] ss:$0 sm:$0xff] }
 0x45e   :  { %v1171_v23 = vrot.slane %v1170_v0, 2  ;;  %v1191_v59 = vpack.c.bf16 %v1167_v42, %v1167_v42  ;;  %v1219_v21 = vunpack.c.l.b16 %v1189_v2  ;;  %v2431_v42 = vld [vmem:[%s2193_s23] ss:$0 sm:$0xff] }
 0x45f   :  { %v1097_v25 = vmul.f32 %v2848_v63, %v1025_v50  ;;  %v1215_v8 = vunpack.c.l.b16 %v1185_v46 }
 0x460   :  { %v1172_v29 = vmax.f32 %v1170_v0, %v1171_v23  ;;  %v1221_v18 = vunpack.c.l.b16 %v1191_v59 }
 0x461   :  { %v1175_v31 = vsel %vm296_vm3, %v1097_v25, -inf  ;;  %v1263_v32 = vpack.c.bf16 %v1097_v25, %v1096_v61  ;;  %v1226_v0 = vsel %vm549_vm6, %v1215_v8, %v1225_v17 }
 0x462   :  { %v1173_v35 = vrot.slane %v1172_v29, 1  ;;  %v1176_v36 = vrot.slane %v1175_v31, 4  ;;  %v1227_v55 = vsel %vm551_vm7, %v1216_v11, %v1226_v0  ;;  %v1231_v23 = vsel %vm545_vm4, %v1221_v18, %v1220_v52 }
 0x463   :  { %2294 = vmatmul.msk.bf16.gmra.mxu3 %vm296_vm3, %v1263_v32  ;;  %v1228_v5 = vsel %vm553_vm8, %v1217_v60, %v1227_v55 }
 0x464   :  { %v1177_v10 = vmax.f32 %v1175_v31, %v1176_v36  ;;  %v1174_v45 = vmax.f32 %v1172_v29, %v1173_v35  ;;  %v1229_v47 = vsel %vm555_vm9, %v1218_v19, %v1228_v5  ;;  %v2868_v29 = vpop.permute.xlu2 %1784  ;;  %v2362_v35 = vld [vmem:[%s2194_s1] sm:$0xff]  ;;  %s2478_s1 = smov 37  }
 0x465   :  { %v1230_v26 = vsel %vm557_vm10, %v1219_v21, %v1229_v47  ;;  %1432 = vmatpush.bf16.msra.mxu2 %v2362_v35  ;;  %s2205_s4 = sld [smem:[%s3069_s0 + %s2478_s1]]  }
 0x466   :  { %v1178_v54 = vrot.slane %v1177_v10, 2  ;;  %v1192_v7 = vpack.c.bf16 %v1174_v45, %v1174_v45 }
 0x468   :  { %v1179_v61 = vmax.f32 %v1177_v10, %v1178_v54  ;;  %v1222_v20 = vunpack.c.l.b16 %v1192_v7 }
 0x46a   :  { %v1180_v14 = vrot.slane %v1179_v61, 1  ;;  %v1232_v25 = vsel %vm547_vm5, %v1222_v20, %v1231_v23 }
 0x46c   :  { %v1181_v15 = vmax.f32 %v1179_v61, %v1180_v14  ;;  %v897_v32 = vpop.permute.xlu2 %896 }
 0x46e   :  { %v1193_v50 = vpack.c.bf16 %v1181_v15, %v1181_v15 }
 0x470   :  { %v1223_v24 = vunpack.c.l.b16 %v1193_v50 }
 0x472   :  { %v1233_v27 = vsel %vm549_vm6, %v1223_v24, %v1232_v25 }
 0x473   :  { %v1234_v28 = vpack.c.b16 %v1233_v27, %v1230_v26 }
 0x475   :  { %2284 = vmatmul.msk.bf16.vlgmr.msrb.gmra.mxu2 %vm296_vm3, %v1234_v28 }
 0x47c   :  { %v890_v30 = vpop.f32.mrf.mxu2 }
 0x47d   :  { %v891_v31 = vadd.f32 %v2430_v13, %v890_v30 }
 0x47f   :  { %v899_v33 = vmul.f32 %v897_v32, %v891_v31 }
 0x481   :  { %901 = vst.msk [vmem:[%s2874_s27] sm:$0xf] %vm900_vm13, %v899_v33 }
 0x482   :  { %903 = vst.msk [vmem:[%s2874_s27 + $0x9] sm:$0xf0] %vm902_vm14, %v899_v33 }
 0x484   :  { %v892_v34 = vpop.f32.mrf.mxu2 }
 0x496   :  { %v1299_v36 = vpop.f32.mrf.mxu3 }
 0x49e   :  { %v1301_v37 = vpop.f32.mrf.mxu3 }
 0x4a6   :  { %v1304_v38 = vpop.f32.mrf.mxu3 }
 0x4ae   :  { %v1306_v44 = vpop.f32.mrf.mxu3 }
 0x4b6   :  { %v1309_v1 = vpop.f32.mrf.mxu3 }
 0x4be   :  { %v1311_v14 = vpop.f32.mrf.mxu3 }
 0x4c6   :  { %v1314_v0 = vpop.f32.mrf.mxu3 }
 0x4ce   :  { %v1316_v5 = vpop.f32.mrf.mxu3 }
 0x4d6   :  { %v1319_v13 = vpop.f32.mrf.mxu3 }
 0x4f8   :  { %v1253_v10 = vpop.f32.mrf.mxu2 }
 0x4f9   :  { %v1254_v43 = vadd.f32 %v2431_v42, %v1253_v10 }
 0x4fb   :  { %v1331_v45 = vrot.slane %v1254_v43, 1  ;;  %v1341_v46 = vperm.slane %v1254_v43, 0  ;;  %v1332_v61 = vrot.slane %v1254_v43, 2  ;;  %v1333_v62 = vrot.slane %v1254_v43, 3 }
 0x4fc   :  { %v1334_v15 = vrot.slane %v1254_v43, 4  ;;  %v1335_v17 = vrot.slane %v1254_v43, 5  ;;  %v1336_v24 = vrot.slane %v1254_v43, 6  ;;  %v1337_v47 = vrot.slane %v1254_v43, 7 }
 0x4fd   :  { %v1342_v48 = vperm.slane %v1331_v45, 0  ;;  %v1365_v49 = vadd.f32 %v1341_v46, %v1299_v36  ;;  %v1343_v7 = vperm.slane %v1332_v61, 0  ;;  %v1344_v8 = vperm.slane %v1333_v62, 0  ;;  %v1321_v36 = vpop.f32.mrf.mxu3 }
 0x4fe   :  { %v1345_v19 = vperm.slane %v1334_v15, 0  ;;  %v1346_v20 = vperm.slane %v1335_v17, 0  ;;  %v1347_v25 = vperm.slane %v1336_v24, 0  ;;  %v1348_v26 = vperm.slane %v1337_v47, 0 }
 0x4ff   :  { %v1366_v54 = vadd.f32 %v1342_v48, %v1301_v37  ;;  %v1377_v57 = vmax.f32 %v1365_v49, 0.0  ;;  %v1367_v2 = vadd.f32 %v1343_v7, %v1304_v38  ;;  %v1368_v4 = vadd.f32 %v1344_v8, %v1306_v44  ;;  %v2900_v8 = vld [vmem:[%s2886_s5] ss:$0 sm:$0xff]  ;;  %s2479_s5 = smov 36  }
 0x500   :  { %v1369_v21 = vadd.f32 %v1345_v19, %v1309_v1  ;;  %v1370_v52 = vadd.f32 %v1346_v20, %v1311_v14  ;;  %v1371_v27 = vadd.f32 %v1347_v25, %v1314_v0  ;;  %v1372_v28 = vadd.f32 %v1348_v26, %v1316_v5  ;;  %v1255_v30 = vpop.f32.mrf.mxu2  ;;  %s2978_s8 = sld [smem:[%s3069_s0 + %s2479_s5]]  }
 0x501   :  { %v1378_v39 = vmax.f32 %v1366_v54, 0.0  ;;  %v1379_v11 = vmax.f32 %v1367_v2, 0.0  ;;  %v1380_v60 = vmax.f32 %v1368_v4, 0.0  ;;  %v1256_v31 = vadd.f32 %v2431_v42, %v1255_v30 }
 0x502   :  { %v1381_v50 = vmax.f32 %v1369_v21, 0.0  ;;  %v1382_v55 = vmax.f32 %v1370_v52, 0.0  ;;  %v1383_v32 = vmax.f32 %v1371_v27, 0.0  ;;  %v1384_v33 = vmax.f32 %v1372_v28, 0.0 }
 0x503   :  { %v1389_v59 = vpack.c.bf16 %v1378_v39, %v1377_v57  ;;  %v1390_v18 = vpack.c.bf16 %v1380_v60, %v1379_v11  ;;  %v1338_v34 = vrot.slane %v1256_v31, 1  ;;  %v1349_v38 = vperm.slane %v1256_v31, 0 }
 0x504   :  { %v1391_v23 = vpack.c.bf16 %v1382_v55, %v1381_v50  ;;  %v1392_v35 = vpack.c.bf16 %v1384_v33, %v1383_v32  ;;  %v1339_v48 = vrot.slane %v1256_v31, 2  ;;  %v1340_v49 = vrot.slane %v1256_v31, 3 }
 0x505   :  { %2299 = vmatmul.msk.bf16.vlgmr.msra.gmra.mxu2 %vm296_vm3, %v1389_v59  ;;  %v1350_v37 = vperm.slane %v1338_v34, 0  ;;  %v1373_v43 = vadd.f32 %v1349_v38, %v1319_v13  ;;  %v1324_v45 = vpop.f32.mrf.mxu3 }
 0x506   :  { %v1351_v42 = vperm.slane %v1339_v48, 0  ;;  %v1352_v57 = vperm.slane %v1340_v49, 0  ;;  %v2363_v49 = vld [vmem:[%s2196_s13] sm:$0xff]  ;;  %s2481_s13 = smov 39  }
 0x507   :  { %v1374_v10 = vadd.f32 %v1350_v37, %v1321_v36  ;;  %v1385_v46 = vmax.f32 %v1373_v43, 0.0  ;;  %1641 = vmatpush.bf16.msra.mxu0 %v2363_v49  ;;  %s2207_s16 = sld [smem:[%s3069_s0 + %s2481_s13]]  }
 0x508   :  { %v1375_v59 = vadd.f32 %v1351_v42, %v1324_v45 }
 0x509   :  { %v1386_v44 = vmax.f32 %v1374_v10, 0.0 }
 0x50a   :  { %v1387_v62 = vmax.f32 %v1375_v59, 0.0 }
 0x50b   :  { %v1393_v54 = vpack.c.bf16 %v1386_v44, %v1385_v46 }
 0x50d   :  { %v1326_v39 = vpop.f32.mrf.mxu3 }
 0x50e   :  { %v1376_v61 = vadd.f32 %v1352_v57, %v1326_v39 }
 0x510   :  { %v1388_v1 = vmax.f32 %v1376_v61, 0.0 }
 0x512   :  { %v1394_v7 = vpack.c.bf16 %v1388_v1, %v1387_v62 }
 0x515   :  { %2300 = vmatmul.msk.bf16.gmra.mxu2 %vm296_vm3, %v1390_v18 }
 0x525   :  { %2301 = vmatmul.msk.bf16.gmra.mxu2 %vm296_vm3, %v1391_v23 }
 0x535   :  { %2302 = vmatmul.msk.bf16.gmra.mxu2 %vm296_vm3, %v1392_v35 }
 0x545   :  { %2303 = vmatmul.msk.bf16.gmra.mxu2 %vm296_vm3, %v1393_v54 }
 0x555   :  { %2304 = vmatmul.msk.bf16.gmra.mxu2 %vm296_vm3, %v1394_v7 }
 0x588   :  { %v1434_v2 = vpop.f32.mrf.mxu2 }
 0x589   :  { %v1435_v4 = vadd.f32 %v2900_v8, %v1434_v2 }
 0x58b   :  { %v1464_v14 = vmax.f32 %v1435_v4, 0.0 }
 0x58d   :  { %v1476_v11 = vmul.f32 %v1464_v14, %v2782_v16 }
 0x58f   :  { %v1488_v60 = vsel %vm296_vm3, %v1476_v11, -inf }
 0x590   :  { %v1489_v18 = vrot.slane %v1488_v60, 4  ;;  %v1436_v15 = vpop.f32.mrf.mxu2 }
 0x591   :  { %v1437_v17 = vadd.f32 %v2900_v8, %v1436_v15 }
 0x592   :  { %v1490_v19 = vmax.f32 %v1488_v60, %v1489_v18 }
 0x593   :  { %v1465_v20 = vmax.f32 %v1437_v17, 0.0 }
 0x594   :  { %v1491_v0 = vrot.slane %v1490_v19, 2 }
 0x595   :  { %v1477_v21 = vmul.f32 %v1465_v20, %v2787_v22 }
 0x596   :  { %v1492_v52 = vmax.f32 %v1490_v19, %v1491_v0 }
 0x597   :  { %v1495_v50 = vsel %vm296_vm3, %v1477_v21, -inf }
 0x598   :  { %v1496_v55 = vrot.slane %v1495_v50, 4  ;;  %v1439_v5 = vpop.f32.mrf.mxu2  ;;  %v1493_v24 = vrot.slane %v1492_v52, 1 }
 0x599   :  { %v1440_v23 = vadd.f32 %v2900_v8, %v1439_v5 }
 0x59a   :  { %v1497_v16 = vmax.f32 %v1495_v50, %v1496_v55  ;;  %v1494_v27 = vmax.f32 %v1492_v52, %v1493_v24 }
 0x59b   :  { %v1466_v47 = vmax.f32 %v1440_v23, 0.0 }
 0x59c   :  { %v1498_v25 = vrot.slane %v1497_v16, 2  ;;  %v1572_v32 = vpack.c.bf16 %v1494_v27, %v1494_v27 }
 0x59d   :  { %v1478_v26 = vmul.f32 %v1466_v47, %v2794_v40 }
 0x59e   :  { %v1499_v28 = vmax.f32 %v1497_v16, %v1498_v25  ;;  %v1602_v37 = vunpack.c.l.b16 %v1572_v32 }
 0x59f   :  { %v1502_v13 = vsel %vm296_vm3, %v1478_v26, -inf }
 0x5a0   :  { %v1500_v30 = vrot.slane %v1499_v28, 1  ;;  %v1503_v31 = vrot.slane %v1502_v13, 4  ;;  %v1441_v22 = vpop.f32.mrf.mxu2 }
 0x5a1   :  { %v1442_v59 = vadd.f32 %v2900_v8, %v1441_v22 }
 0x5a2   :  { %v1501_v33 = vmax.f32 %v1499_v28, %v1500_v30  ;;  %v1504_v34 = vmax.f32 %v1502_v13, %v1503_v31 }
 0x5a3   :  { %v1467_v1 = vmax.f32 %v1442_v59, 0.0 }
 0x5a4   :  { %v1573_v35 = vpack.c.bf16 %v1501_v33, %v1501_v33  ;;  %v1505_v36 = vrot.slane %v1504_v34, 2 }
 0x5a5   :  { %v1479_v18 = vmul.f32 %v1467_v1, %v2796_v41 }
 0x5a6   :  { %v1603_v38 = vunpack.c.l.b16 %v1573_v35  ;;  %v1506_v10 = vmax.f32 %v1504_v34, %v1505_v36 }
 0x5a7   :  { %v1509_v21 = vsel %vm296_vm3, %v1479_v18, -inf }
 0x5a8   :  { %v1614_v40 = vsel %vm545_vm4, %v1603_v38, %v1602_v37  ;;  %v1507_v43 = vrot.slane %v1506_v10, 1  ;;  %v1444_v44 = vpop.f32.mrf.mxu2  ;;  %v1510_v24 = vrot.slane %v1509_v21, 4 }
 0x5a9   :  { %v1445_v61 = vadd.f32 %v2900_v8, %v1444_v44 }
 0x5aa   :  { %v1508_v45 = vmax.f32 %v1506_v10, %v1507_v43  ;;  %v1511_v26 = vmax.f32 %v1509_v21, %v1510_v24  ;;  %v2364_v10 = vld [vmem:[%s2198_s17] sm:$0xff]  ;;  %s2482_s17 = smov 41  }
 0x5ab   :  { %v1468_v11 = vmax.f32 %v1445_v61, 0.0  ;;  %1673 = vmatpush.bf16.msrb.mxu0 %v2364_v10  ;;  %s3024_s20 = sld [smem:[%s3069_s0 + %s2482_s17]]  }
 0x5ac   :  { %v1574_v46 = vpack.c.bf16 %v1508_v45, %v1508_v45  ;;  %v1512_v36 = vrot.slane %v1511_v26, 2 }
 0x5ad   :  { %v1480_v20 = vmul.f32 %v1468_v11, %v2805_v53 }
 0x5ae   :  { %v1604_v48 = vunpack.c.l.b16 %v1574_v46 }
 0x5af   :  { %v1516_v41 = vsel %vm296_vm3, %v1480_v20, -inf }
 0x5b0   :  { %v2916_v54 = vsel %vm547_vm5, %v1604_v48, %v1614_v40  ;;  %v1446_v42 = vpop.f32.mrf.mxu2  ;;  %v1513_v48 = vmax.f32 %v1511_v26, %v1512_v36 }
 0x5b1   :  { %v1447_v62 = vadd.f32 %v2900_v8, %v1446_v42 }
 0x5b3   :  { %v1469_v60 = vmax.f32 %v1447_v62, 0.0 }
 0x5b5   :  { %v1481_v0 = vmul.f32 %v1469_v60, %v2808_v58  ;;  %v1517_v58 = vrot.slane %v1516_v41, 4 }
 0x5b7   :  { %v1523_v16 = vsel %vm296_vm3, %v1481_v0, -inf  ;;  %v1518_v32 = vmax.f32 %v1516_v41, %v1517_v58 }
 0x5b8   :  { %v1449_v57 = vpop.f32.mrf.mxu2  ;;  %v1524_v25 = vrot.slane %v1523_v16, 4 }
 0x5b9   :  { %v1450_v7 = vadd.f32 %v2900_v8, %v1449_v57  ;;  %v1519_v43 = vrot.slane %v1518_v32, 2 }
 0x5ba   :  { %v1525_v34 = vmax.f32 %v1523_v16, %v1524_v25 }
 0x5bb   :  { %v1470_v15 = vmax.f32 %v1450_v7, 0.0  ;;  %v1520_v62 = vmax.f32 %v1518_v32, %v1519_v43 }
 0x5bc   :  { %v1526_v45 = vrot.slane %v1525_v34, 2 }
 0x5bd   :  { %v1482_v52 = vmul.f32 %v1470_v15, %v2817_v9 }
 0x5be   :  { %v1527_v7 = vmax.f32 %v1525_v34, %v1526_v45 }
 0x5bf   :  { %v1530_v53 = vsel %vm296_vm3, %v1482_v52, -inf }
 0x5c0   :  { %v1451_v39 = vpop.f32.mrf.mxu2  ;;  %v1531_v27 = vrot.slane %v1530_v53, 4  ;;  %v1528_v20 = vrot.slane %v1527_v7, 1 }
 0x5c1   :  { %v1452_v4 = vadd.f32 %v2900_v8, %v1451_v39 }
 0x5c2   :  { %v1532_v37 = vmax.f32 %v1530_v53, %v1531_v27  ;;  %v1529_v16 = vmax.f32 %v1527_v7, %v1528_v20  ;;  %v1698_v20 = vld [vmem:[%s2200_s30 + $0x8] sm:$0xff] }
 0x5c3   :  { %v1471_v17 = vmax.f32 %v1452_v4, 0.0 }
 0x5c4   :  { %v1533_v49 = vrot.slane %v1532_v37, 2  ;;  %v1577_v27 = vpack.c.bf16 %v1529_v16, %v1529_v16  ;;  %v2985_v16 = vpop.permute.xlu1 %1779 }
 0x5c5   :  { %v1483_v55 = vmul.f32 %v1471_v17, %v2819_v12  ;;  %v1521_v17 = vrot.slane %v1520_v62, 1 }
 0x5c6   :  { %v1534_v11 = vmax.f32 %v1532_v37, %v1533_v49  ;;  %v1607_v36 = vunpack.c.l.b16 %v1577_v27 }
 0x5c7   :  { %v1537_v9 = vsel %vm296_vm3, %v1483_v55, -inf  ;;  %v1522_v24 = vmax.f32 %v1520_v62, %v1521_v17  ;;  %v2317_v62 = vld [vmem:[%s2203_s25] sm:$0xf] }
 0x5c8   :  { %v1454_v2 = vpop.f32.mrf.mxu2  ;;  %v1538_v13 = vrot.slane %v1537_v9, 4 }
 0x5c9   :  { %v1455_v14 = vadd.f32 %v2900_v8, %v1454_v2  ;;  %v1576_v26 = vpack.c.bf16 %v1522_v24, %v1522_v24  ;;  %v2983_v24 = vpop.permute.xlu0 %1774 }
 0x5ca   :  { %v1539_v40 = vmax.f32 %v1537_v9, %v1538_v13 }
 0x5cb   :  { %v1472_v19 = vmax.f32 %v1455_v14, 0.0  ;;  %v1514_v14 = vrot.slane %v1513_v48, 1 }
 0x5cc   :  { %v1540_v57 = vrot.slane %v1539_v40, 2 }
 0x5cd   :  { %v1484_v5 = vmul.f32 %v1472_v19, %v2829_v51  ;;  %v1515_v52 = vmax.f32 %v1513_v48, %v1514_v14  ;;  %v2433_v14 = vld [vmem:[%s2897_s9] ss:$0 sm:$0xff]  ;;  %s2480_s9 = smov 38  }
 0x5ce   :  { %v1541_v60 = vmax.f32 %v1539_v40, %v1540_v57  ;;  %s2206_s12 = sld [smem:[%s3069_s0 + %s2480_s9]]  }
 0x5cf   :  { %v1544_v12 = vsel %vm296_vm3, %v1484_v5, -inf }
 0x5d0   :  { %v1456_v50 = vpop.f32.mrf.mxu2  ;;  %v1545_v30 = vrot.slane %v1544_v12, 4 }
 0x5d1   :  { %v1457_v23 = vadd.f32 %v2900_v8, %v1456_v50  ;;  %v1535_v50 = vrot.slane %v1534_v11, 1 }
 0x5d3   :  { %v1473_v47 = vmax.f32 %v1457_v23, 0.0  ;;  %v1536_v58 = vmax.f32 %v1534_v11, %v1535_v50  ;;  %v1699_v50 = vld [vmem:[%s2200_s30 + $0x10] sm:$0xff] }
 0x5d5   :  { %v1485_v51 = vmul.f32 %v1473_v47, %v2813_v3  ;;  %v1546_v3 = vmax.f32 %v1544_v12, %v1545_v30  ;;  %v1575_v12 = vpack.c.bf16 %v1515_v52, %v1515_v52  ;;  %v1578_v30 = vpack.c.bf16 %v1536_v58, %v1536_v58  ;;  %v2366_v52 = vld [vmem:[%s2206_s12] sm:$0xff]  ;;  %v2990_v58 = vpop.permute.xlu1 %1794 }
 0x5d6   :  { %1891 = vmatpush.bf16.msrb.mxu1 %v2366_v52 }
 0x5d7   :  { %v1551_v28 = vsel %vm296_vm3, %v1485_v51, -inf  ;;  %v1547_v39 = vrot.slane %v1546_v3, 2  ;;  %v1608_v10 = vunpack.c.l.b16 %v1578_v30  ;;  %v2435_v30 = vld [vmem:[%s2978_s8] ss:$0 sm:$0xff]  ;;  %s2487_s8 = smov 45  }
 0x5d8   :  { %v1552_v31 = vrot.slane %v1551_v28, 4  ;;  %v1459_v22 = vpop.f32.mrf.mxu2  ;;  %s2213_s11 = sld [smem:[%s3069_s0 + %s2487_s8]]  }
 0x5d9   :  { %v1460_v33 = vadd.f32 %v2900_v8, %v1459_v22  ;;  %v1548_v18 = vmax.f32 %v1546_v3, %v1547_v39  ;;  %v1605_v22 = vunpack.c.l.b16 %v1575_v12 }
 0x5da   :  { %v1553_v35 = vmax.f32 %v1551_v28, %v1552_v31 }
 0x5db   :  { %v1474_v38 = vmax.f32 %v1460_v33, 0.0  ;;  %v1549_v5 = vrot.slane %v1548_v18, 1  ;;  %v1616_v3 = vsel %vm549_vm6, %v1605_v22, %v2916_v54 }
 0x5dc   :  { %v1554_v46 = vrot.slane %v1553_v35, 2 }
 0x5dd   :  { %v1486_v44 = vmul.f32 %v1474_v38, %v2843_v56  ;;  %v1688_v27 = vpop.permute.xlu1 %1687 }
 0x5de   :  { %v1555_v2 = vmax.f32 %v1553_v35, %v1554_v46  ;;  %v1606_v35 = vunpack.c.l.b16 %v1576_v26 }
 0x5df   :  { %v1558_v42 = vsel %vm296_vm3, %v1486_v44, -inf }
 0x5e0   :  { %v1559_v59 = vrot.slane %v1558_v42, 4  ;;  %v1461_v61 = vpop.f32.mrf.mxu2  ;;  %v1556_v0 = vrot.slane %v1555_v2, 1  ;;  %v1617_v46 = vsel %vm551_vm7, %v1606_v35, %v1616_v3 }
 0x5e1   :  { %v1462_v1 = vadd.f32 %v2900_v8, %v1461_v61  ;;  %v1542_v8 = vrot.slane %v1541_v60, 1  ;;  %v1618_v48 = vsel %vm553_vm8, %v1607_v36, %v1617_v46 }
 0x5e2   :  { %v1560_v4 = vmax.f32 %v1558_v42, %v1559_v59  ;;  %v1557_v47 = vmax.f32 %v1555_v2, %v1556_v0  ;;  %v1619_v57 = vsel %vm555_vm9, %v1608_v10, %v1618_v48 }
 0x5e3   :  { %v1475_v56 = vmax.f32 %v1462_v1, 0.0  ;;  %v1543_v51 = vmax.f32 %v1541_v60, %v1542_v8  ;;  %v2365_v1 = vld [vmem:[%s2203_s25] sm:$0x30]  ;;  %s2484_s25 = smov 42  }
 0x5e4   :  { %v1561_v15 = vrot.slane %v1560_v4, 2  ;;  %v1581_v28 = vpack.c.bf16 %v1557_v47, %v1557_v47  ;;  %v2318_v7 = vor.u32 %v2365_v1, %v2317_v62  ;;  %v2987_v47 = vpop.permute.xlu0 %1789  ;;  %s2210_s29 = sld [smem:[%s3069_s0 + %s2484_s25]]  }
 0x5e5   :  { %v1487_v19 = vmul.f32 %v1475_v56, %v2848_v63  ;;  %v1550_v63 = vmax.f32 %v1548_v18, %v1549_v5  ;;  %v1579_v32 = vpack.c.bf16 %v1543_v51, %v1543_v51  ;;  %v1701_v5 = vld [vmem:[%s2200_s30 + $0x20] sm:$0xff] }
 0x5e6   :  { %v1562_v21 = vmax.f32 %v1560_v4, %v1561_v15  ;;  %v1611_v37 = vunpack.c.l.b16 %v1581_v28  ;;  %v1735_v2 = vsel %vm236_vm0, %v2318_v7, 0  ;;  %vm1692_vm0 = vcmask 259072  }
 0x5e7   :  { %v1565_v55 = vsel %vm296_vm3, %v1487_v19, -inf  ;;  %v1580_v33 = vpack.c.bf16 %v1550_v63, %v1550_v63  ;;  %v1609_v43 = vunpack.c.l.b16 %v1579_v32  ;;  %v1697_v19 = vld [vmem:[%s2200_s30] sm:$0xff] }
 0x5e8   :  { %v1563_v23 = vrot.slane %v1562_v21, 1  ;;  %v1566_v41 = vrot.slane %v1565_v55, 4  ;;  %v1710_v0 = vpack.c.bf16 %v1698_v20, %v1697_v19 }
 0x5e9   :  { %v1610_v44 = vunpack.c.l.b16 %v1580_v33  ;;  %v1620_v59 = vsel %vm557_vm10, %v1609_v43, %v1619_v57 }
 0x5ea   :  { %v1567_v53 = vmax.f32 %v1565_v55, %v1566_v41  ;;  %v1564_v9 = vmax.f32 %v1562_v21, %v1563_v23  ;;  %v2367_v21 = vld [vmem:[%s2205_s4] sm:$0xff]  ;;  %v1700_v55 = vld [vmem:[%s2200_s30 + $0x18] sm:$0xff]  ;;  %v1702_v23 = vld [vmem:[%s2200_s30 + $0x28] sm:$0xff]  ;;  %s2485_s30 = smov 43   ;;  %s2486_s4 = smov 44  }
 0x5eb   :  { %v1621_v49 = vsel %vm545_vm4, %v1611_v37, %v1610_v44  ;;  %1924 = vmatpush.bf16.msrb.mxu3 %v2367_v21  ;;  %v1711_v8 = vpack.c.bf16 %v1700_v55, %v1699_v50  ;;  %v1712_v41 = vpack.c.bf16 %v1702_v23, %v1701_v5  ;;  %s3038_s3 = sld [smem:[%s3069_s0 + %s2485_s30]]  }
 0x5ec   :  { %v1568_v25 = vrot.slane %v1567_v53, 2  ;;  %v1582_v31 = vpack.c.bf16 %v1564_v9, %v1564_v9  ;;  %v1683_v51 = vpop.permute.xlu0 %1682  ;;  %s2212_s7 = sld [smem:[%s3069_s0 + %s2486_s4]]  }
 0x5ee   :  { %v1569_v13 = vmax.f32 %v1567_v53, %v1568_v25  ;;  %v1612_v40 = vunpack.c.l.b16 %v1582_v31  ;;  %v2434_v53 = vld [vmem:[%s2961_s21] ss:$0 sm:$0xff]  ;;  %s2483_s21 = smov 40  }
 0x5ef   :  { %s2208_s24 = sld [smem:[%s3069_s0 + %s2483_s21]]  }
 0x5f0   :  { %v1570_v34 = vrot.slane %v1569_v13, 1  ;;  %v1622_v39 = vsel %vm547_vm5, %v1612_v40, %v1621_v49 }
 0x5f2   :  { %v1571_v38 = vmax.f32 %v1569_v13, %v1570_v34 }
 0x5f4   :  { %v1583_v45 = vpack.c.bf16 %v1571_v38, %v1571_v38 }
 0x5f6   :  { %v1613_v42 = vunpack.c.l.b16 %v1583_v45 }
 0x5f8   :  { %v1623_v61 = vsel %vm549_vm6, %v1613_v42, %v1622_v39 }
 0x5f9   :  { %v1624_v54 = vpack.c.b16 %v1623_v61, %v1620_v59 }
 0x5fb   :  { %2309 = vmatmul.msk.bf16.vlgmr.msra.gmra.mxu0 %vm296_vm3, %v1624_v54 }
 0x5fc   :  { %1744 = vmatpush.bf16.msra.mxu0 %v1735_v2 }
 0x678   :  { %v1643_v4 = vpop.f32.mrf.mxu0 }
 0x679   :  { %v1644_v11 = vadd.f32 %v2433_v14, %v1643_v4 }
 0x67b   :  { %v1648_v18 = vmax.f32 %v1644_v11, 0.0 }
 0x680   :  { %v1645_v56 = vpop.f32.mrf.mxu0 }
 0x681   :  { %v1646_v60 = vadd.f32 %v2433_v14, %v1645_v56 }
 0x683   :  { %v1649_v15 = vmax.f32 %v1646_v60, 0.0 }
 0x685   :  { %v1650_v17 = vpack.c.bf16 %v1649_v15, %v1648_v18 }
 0x687   :  { %2314 = vmatmul.msk.bf16.vlgmr.msrb.gmra.mxu0 %vm296_vm3, %v1650_v17 }
 0x697   :  { %2319 = vmatmul.msk.bf16.vlgmr.msra.gmra.mxu0 %vm1724_vm15, %v1710_v0 }
 0x6a7   :  { %2320 = vmatmul.msk.bf16.gmra.mxu0 %vm1724_vm15, %v1711_v8 }
 0x6b7   :  { %2321 = vmatmul.msk.bf16.gmra.mxu0 %vm1724_vm15, %v1712_v41 }
 0x704   :  { %v1675_v9 = vpop.f32.mrf.mxu0 }
 0x705   :  { %v1676_v12 = vadd.f32 %v2434_v53, %v1675_v9 }
 0x707   :  { %v1690_v63 = vmul.f32 %v1683_v51, %v1676_v12 }
 0x709   :  { %1693 = vst.msk [vmem:[%s2874_s27 + $0x4] sm:$0x3f] %vm1692_vm0, %v1690_v63 }
 0x70a   :  { %1695 = vst.msk [vmem:[%s2874_s27 + $0xb] sm:$0xc0] %vm1694_vm1, %v1690_v63 }
 0x70c   :  { %v1677_v25 = vpop.f32.mrf.mxu0 }
 0x70d   :  { %v1678_v26 = vadd.f32 %v2434_v53, %v1677_v25 }
 0x70f   :  { %v1691_v28 = vmul.f32 %v1688_v27, %v1678_v26 }
 0x711   :  { %1696 = vst.msk [vmem:[%s2874_s27 + $0x13] sm:$0xf] %vm900_vm13, %v1691_v28 }
 0x714   :  { %v1746_v13 = vpop.f32.mrf.mxu0 }
 0x715   :  { %v1747_v31 = vadd.f32 %v2435_v30, %v1746_v13 }
 0x717   :  { %v1761_v32 = vmax.f32 %v1747_v31, 0.0 }
 0x719   :  { %v1797_v35 = vmul.f32 %v2853_v6, %v1761_v32 }
 0x71b   :  { %v1803_v48 = vsel %vm296_vm3, %v1797_v35, -inf }
 0x71c   :  { %v1748_v22 = vpop.f32.mrf.mxu0  ;;  %v1804_v59 = vrot.slane %v1803_v48, 4 }
 0x71d   :  { %v1749_v33 = vadd.f32 %v2435_v30, %v1748_v22 }
 0x71e   :  { %v1805_v14 = vmax.f32 %v1803_v48, %v1804_v59 }
 0x71f   :  { %v1762_v34 = vmax.f32 %v1749_v33, 0.0 }
 0x720   :  { %v1806_v17 = vrot.slane %v1805_v14, 2 }
 0x721   :  { %v1798_v36 = vmul.f32 %v2983_v24, %v1762_v34 }
 0x722   :  { %v1807_v8 = vmax.f32 %v1805_v14, %v1806_v17 }
 0x723   :  { %v1897_v37 = vpack.c.bf16 %v1798_v36, %v1797_v35  ;;  %v1810_v44 = vsel %vm296_vm3, %v1798_v36, -inf }
 0x724   :  { %v1751_v38 = vpop.f32.mrf.mxu0  ;;  %v1811_v42 = vrot.slane %v1810_v44, 4  ;;  %v1808_v63 = vrot.slane %v1807_v8, 1 }
 0x725   :  { %v1752_v10 = vadd.f32 %v2435_v30, %v1751_v38  ;;  %2331 = vmatmul.msk.bf16.vlgmr.msrb.gmra.mxu3 %vm296_vm3, %v1897_v37 }
 0x726   :  { %v1812_v62 = vmax.f32 %v1810_v44, %v1811_v42 }
 0x727   :  { %v1763_v40 = vmax.f32 %v1752_v10, 0.0 }
 0x728   :  { %v1813_v60 = vrot.slane %v1812_v62, 2 }
 0x729   :  { %v1799_v3 = vmul.f32 %v2985_v16, %v1763_v40 }
 0x72a   :  { %v1814_v0 = vmax.f32 %v1812_v62, %v1813_v60 }
 0x72b   :  { %v1817_v46 = vsel %vm296_vm3, %v1799_v3, -inf }
 0x72c   :  { %v1753_v43 = vpop.f32.mrf.mxu0  ;;  %v1818_v57 = vrot.slane %v1817_v46, 4  ;;  %v1815_v53 = vrot.slane %v1814_v0, 1 }
 0x72d   :  { %v1754_v45 = vadd.f32 %v2435_v30, %v1753_v43 }
 0x72e   :  { %v1819_v2 = vmax.f32 %v1817_v46, %v1818_v57  ;;  %v1816_v13 = vmax.f32 %v1814_v0, %v1815_v53 }
 0x72f   :  { %v1764_v49 = vmax.f32 %v1754_v45, 0.0 }
 0x730   :  { %v1820_v18 = vrot.slane %v1819_v2, 2  ;;  %v1846_v36 = vpack.c.bf16 %v1816_v13, %v1816_v13 }
 0x731   :  { %v1800_v39 = vmul.f32 %v2868_v29, %v1764_v49 }
 0x732   :  { %v1821_v50 = vmax.f32 %v1819_v2, %v1820_v18  ;;  %v1864_v44 = vunpack.c.l.b16 %v1846_v36 }
 0x733   :  { %v1824_v61 = vsel %vm296_vm3, %v1800_v39, -inf  ;;  %v1898_v54 = vpack.c.bf16 %v1800_v39, %v1799_v3 }
 0x734   :  { %v1825_v1 = vrot.slane %v1824_v61, 4  ;;  %v1756_v7 = vpop.f32.mrf.mxu0  ;;  %v1822_v12 = vrot.slane %v1821_v50, 1 }
 0x735   :  { %v1757_v4 = vadd.f32 %v2435_v30, %v1756_v7  ;;  %2332 = vmatmul.msk.bf16.gmra.mxu3 %vm296_vm3, %v1898_v54 }
 0x736   :  { %v1826_v11 = vmax.f32 %v1824_v61, %v1825_v1  ;;  %v1823_v32 = vmax.f32 %v1821_v50, %v1822_v12 }
 0x737   :  { %v1765_v56 = vmax.f32 %v1757_v4, 0.0  ;;  %v2368_v4 = vld [vmem:[%s2208_s24] sm:$0xff] }
 0x738   :  { %v1827_v19 = vrot.slane %v1826_v11, 2  ;;  %v1847_v38 = vpack.c.bf16 %v1823_v32, %v1823_v32  ;;  %2002 = vmatpush.bf16.msra.mxu1 %v2368_v4 }
 0x739   :  { %v1801_v15 = vmul.f32 %v2987_v47, %v1765_v56  ;;  %v2436_v56 = vld [vmem:[%s2207_s16] ss:$0 sm:$0xff] }
 0x73a   :  { %v1828_v5 = vmax.f32 %v1826_v11, %v1827_v19  ;;  %v1865_v46 = vunpack.c.l.b16 %v1847_v38 }
 0x73b   :  { %v1831_v20 = vsel %vm296_vm3, %v1801_v15, -inf }
 0x73c   :  { %v1832_v21 = vrot.slane %v1831_v20, 4  ;;  %v1758_v52 = vpop.f32.mrf.mxu0  ;;  %v1829_v25 = vrot.slane %v1828_v5, 1 }
 0x73d   :  { %v1759_v55 = vadd.f32 %v2435_v30, %v1758_v52  ;;  %v1809_v30 = vmax.f32 %v1807_v8, %v1808_v63 }
 0x73e   :  { %v1833_v23 = vmax.f32 %v1831_v20, %v1832_v21  ;;  %v1830_v33 = vmax.f32 %v1828_v5, %v1829_v25 }
 0x73f   :  { %v1766_v41 = vmax.f32 %v1759_v55, 0.0  ;;  %v1845_v10 = vpack.c.bf16 %v1809_v30, %v1809_v30 }
 0x740   :  { %v1834_v9 = vrot.slane %v1833_v23, 2  ;;  %v1848_v40 = vpack.c.bf16 %v1830_v33, %v1830_v33 }
 0x741   :  { %v1802_v51 = vmul.f32 %v2990_v58, %v1766_v41  ;;  %v1863_v48 = vunpack.c.l.b16 %v1845_v10  ;;  %v2369_v41 = vld [vmem:[%s2210_s29] sm:$0xff] }
 0x742   :  { %v1835_v26 = vmax.f32 %v1833_v23, %v1834_v9  ;;  %v1866_v49 = vunpack.c.l.b16 %v1848_v40  ;;  %2119 = vmatpush.bf16.msrb.mxu2 %v2369_v41  ;;  %v2437_v40 = vld [vmem:[%s3024_s20] ss:$0 sm:$0xff] }
 0x743   :  { %v1838_v27 = vsel %vm296_vm3, %v1802_v51, -inf  ;;  %v1899_v28 = vpack.c.bf16 %v1802_v51, %v1801_v15  ;;  %v1869_v39 = vsel %vm545_vm4, %v1864_v44, %v1863_v48 }
 0x744   :  { %v1836_v31 = vrot.slane %v1835_v26, 1  ;;  %v1839_v22 = vrot.slane %v1838_v27, 4  ;;  %v1870_v61 = vsel %vm547_vm5, %v1865_v46, %v1869_v39 }
 0x745   :  { %2333 = vmatmul.msk.bf16.gmra.mxu3 %vm296_vm3, %v1899_v28  ;;  %v1871_v54 = vsel %vm549_vm6, %v1866_v49, %v1870_v61 }
 0x746   :  { %v1840_v34 = vmax.f32 %v1838_v27, %v1839_v22  ;;  %v1837_v35 = vmax.f32 %v1835_v26, %v1836_v31 }
 0x748   :  { %v1841_v37 = vrot.slane %v1840_v34, 2  ;;  %v1849_v43 = vpack.c.bf16 %v1837_v35, %v1837_v35 }
 0x74a   :  { %v1842_v3 = vmax.f32 %v1840_v34, %v1841_v37  ;;  %v1867_v57 = vunpack.c.l.b16 %v1849_v43 }
 0x74c   :  { %v1843_v45 = vrot.slane %v1842_v3, 1  ;;  %v1872_v1 = vsel %vm551_vm7, %v1867_v57, %v1871_v54 }
 0x74e   :  { %v1844_v42 = vmax.f32 %v1842_v3, %v1843_v45 }
 0x750   :  { %v1850_v59 = vpack.c.bf16 %v1844_v42, %v1844_v42 }
 0x752   :  { %v1868_v62 = vunpack.c.l.b16 %v1850_v59 }
 0x754   :  { %v1873_v7 = vsel %vm553_vm8, %v1868_v62, %v1872_v1 }
 0x755   :  { %v1874_v2 = vpack.c.b16 %v1873_v7, %v1873_v7 }
 0x757   :  { %2326 = vmatmul.msk.bf16.vlgmr.msrb.gmra.mxu1 %vm296_vm3, %v1874_v2 }
 0x7a8   :  { %v1926_v14 = vpop.f32.mrf.mxu3 }
 0x7b0   :  { %v1928_v11 = vpop.f32.mrf.mxu3 }
 0x7b8   :  { %v1931_v19 = vpop.f32.mrf.mxu3 }
 0x7c0   :  { %v1933_v53 = vpop.f32.mrf.mxu3 }
 0x7c8   :  { %v1936_v27 = vpop.f32.mrf.mxu3 }
 0x7d0   :  { %v1938_v30 = vpop.f32.mrf.mxu3 }
 0x7d4   :  { %v1893_v60 = vpop.f32.mrf.mxu1 }
 0x7d5   :  { %v1894_v18 = vadd.f32 %v2436_v56, %v1893_v60 }
 0x7d7   :  { %v1942_v15 = vrot.slane %v1894_v18, 1  ;;  %v1947_v17 = vperm.slane %v1894_v18, 0  ;;  %v1943_v5 = vrot.slane %v1894_v18, 2  ;;  %v1944_v23 = vrot.slane %v1894_v18, 3 }
 0x7d8   :  { %v1945_v13 = vrot.slane %v1894_v18, 4  ;;  %v1946_v31 = vrot.slane %v1894_v18, 5 }
 0x7d9   :  { %v1948_v20 = vperm.slane %v1942_v15, 0  ;;  %v1959_v0 = vadd.f32 %v1947_v17, %v1926_v14  ;;  %v1949_v9 = vperm.slane %v1943_v5, 0  ;;  %v1950_v12 = vperm.slane %v1944_v23, 0 }
 0x7da   :  { %v1951_v22 = vperm.slane %v1945_v13, 0  ;;  %v1952_v32 = vperm.slane %v1946_v31, 0 }
 0x7db   :  { %v1960_v21 = vadd.f32 %v1948_v20, %v1928_v11  ;;  %v1965_v50 = vmax.f32 %v1959_v0, 0.0  ;;  %v1961_v51 = vadd.f32 %v1949_v9, %v1931_v19  ;;  %v1962_v63 = vadd.f32 %v1950_v12, %v1933_v53  ;;  %v2370_v20 = vld [vmem:[%s2212_s7] sm:$0xff] }
 0x7dc   :  { %v1895_v52 = vpop.f32.mrf.mxu1  ;;  %v1963_v33 = vadd.f32 %v1951_v22, %v1936_v27  ;;  %v1964_v34 = vadd.f32 %v1952_v32, %v1938_v30  ;;  %2149 = vmatpush.bf16.msrb.mxu0 %v2370_v20 }
 0x7dd   :  { %v1966_v55 = vmax.f32 %v1960_v21, 0.0  ;;  %v1967_v25 = vmax.f32 %v1961_v51, 0.0  ;;  %v1968_v26 = vmax.f32 %v1962_v63, 0.0 }
 0x7de   :  { %v1969_v35 = vmax.f32 %v1963_v33, 0.0  ;;  %v1970_v36 = vmax.f32 %v1964_v34, 0.0 }
 0x7df   :  { %v1971_v8 = vpack.c.bf16 %v1966_v55, %v1965_v50  ;;  %v1972_v28 = vpack.c.bf16 %v1968_v26, %v1967_v25 }
 0x7e0   :  { %v1973_v37 = vpack.c.bf16 %v1970_v36, %v1969_v35 }
 0x7e1   :  { %2338 = vmatmul.msk.bf16.vlgmr.msra.gmra.mxu1 %vm296_vm3, %v1971_v8 }
 0x7f1   :  { %2339 = vmatmul.msk.bf16.gmra.mxu1 %vm296_vm3, %v1972_v28 }
 0x801   :  { %2340 = vmatmul.msk.bf16.gmra.mxu1 %vm296_vm3, %v1973_v37 }
 0x85e   :  { %v2004_v38 = vpop.f32.mrf.mxu1 }
 0x85f   :  { %v2005_v43 = vadd.f32 %v2437_v40, %v2004_v38 }
 0x861   :  { %v2019_v48 = vmax.f32 %v2005_v43, 0.0 }
 0x863   :  { %v2025_v39 = vmul.f32 %v2019_v48, %v2853_v6 }
 0x865   :  { %v2031_v1 = vsel %vm296_vm3, %v2025_v39, -inf }
 0x866   :  { %v2006_v10 = vpop.f32.mrf.mxu1  ;;  %v2032_v4 = vrot.slane %v2031_v1, 4 }
 0x867   :  { %v2007_v3 = vadd.f32 %v2437_v40, %v2006_v10 }
 0x868   :  { %v2033_v15 = vmax.f32 %v2031_v1, %v2032_v4  ;;  %v2438_v4 = vld [vmem:[%s3038_s3] ss:$0 sm:$0xff] }
 0x869   :  { %v2020_v45 = vmax.f32 %v2007_v3, 0.0 }
 0x86a   :  { %v2034_v50 = vrot.slane %v2033_v15, 2 }
 0x86b   :  { %v2026_v42 = vmul.f32 %v2020_v45, %v2983_v24 }
 0x86c   :  { %v2035_v9 = vmax.f32 %v2033_v15, %v2034_v50 }
 0x86d   :  { %v2038_v61 = vsel %vm296_vm3, %v2026_v42, -inf }
 0x86e   :  { %v2009_v44 = vpop.f32.mrf.mxu1  ;;  %v2039_v2 = vrot.slane %v2038_v61, 4 }
 0x86f   :  { %v2010_v46 = vadd.f32 %v2437_v40, %v2009_v44 }
 0x870   :  { %v2040_v14 = vmax.f32 %v2038_v61, %v2039_v2 }
 0x871   :  { %v2021_v49 = vmax.f32 %v2010_v46, 0.0 }
 0x872   :  { %v2041_v0 = vrot.slane %v2040_v14, 2 }
 0x873   :  { %v2027_v57 = vmul.f32 %v2021_v49, %v2985_v16 }
 0x874   :  { %v2042_v8 = vmax.f32 %v2040_v14, %v2041_v0 }
 0x875   :  { %v2045_v62 = vsel %vm296_vm3, %v2027_v57, -inf }
 0x876   :  { %v2011_v59 = vpop.f32.mrf.mxu1  ;;  %v2046_v24 = vrot.slane %v2045_v62, 4  ;;  %v2043_v25 = vrot.slane %v2042_v8, 1 }
 0x877   :  { %v2012_v54 = vadd.f32 %v2437_v40, %v2011_v59 }
 0x878   :  { %v2047_v60 = vmax.f32 %v2045_v62, %v2046_v24  ;;  %v2044_v32 = vmax.f32 %v2042_v8, %v2043_v25 }
 0x879   :  { %v2022_v7 = vmax.f32 %v2012_v54, 0.0 }
 0x87a   :  { %v2048_v21 = vrot.slane %v2047_v60, 2  ;;  %v2074_v10 = vpack.c.bf16 %v2044_v32, %v2044_v32 }
 0x87b   :  { %v2028_v16 = vmul.f32 %v2022_v7, %v2868_v29 }
 0x87c   :  { %v2049_v41 = vmax.f32 %v2047_v60, %v2048_v21  ;;  %v2092_v46 = vunpack.c.l.b16 %v2074_v10 }
 0x87d   :  { %v2052_v6 = vsel %vm296_vm3, %v2028_v16, -inf }
 0x87e   :  { %v2053_v11 = vrot.slane %v2052_v6, 4  ;;  %v2014_v56 = vpop.f32.mrf.mxu1  ;;  %v2050_v27 = vrot.slane %v2049_v41, 1 }
 0x87f   :  { %v2015_v18 = vadd.f32 %v2437_v40, %v2014_v56 }
 0x880   :  { %v2054_v17 = vmax.f32 %v2052_v6, %v2053_v11  ;;  %v2051_v34 = vmax.f32 %v2049_v41, %v2050_v27 }
 0x881   :  { %v2023_v19 = vmax.f32 %v2015_v18, 0.0  ;;  %v2439_v18 = vld [vmem:[%s2213_s11] ss:$0 sm:$0xff] }
 0x882   :  { %v2055_v55 = vrot.slane %v2054_v17, 2  ;;  %v2075_v3 = vpack.c.bf16 %v2051_v34, %v2051_v34 }
 0x883   :  { %v2029_v52 = vmul.f32 %v2023_v19, %v2987_v47  ;;  %v2036_v47 = vrot.slane %v2035_v9, 1  ;;  %v2158_v19 = vpop.permute.xlu2 %2157 }
 0x884   :  { %v2056_v12 = vmax.f32 %v2054_v17, %v2055_v55  ;;  %v2093_v49 = vunpack.c.l.b16 %v2075_v3 }
 0x885   :  { %v2059_v29 = vsel %vm296_vm3, %v2029_v52, -inf  ;;  %v2037_v35 = vmax.f32 %v2035_v9, %v2036_v47 }
 0x886   :  { %v2060_v5 = vrot.slane %v2059_v29, 4  ;;  %v2016_v23 = vpop.f32.mrf.mxu1  ;;  %v2057_v13 = vrot.slane %v2056_v12, 1 }
 0x887   :  { %v2017_v53 = vadd.f32 %v2437_v40, %v2016_v23  ;;  %v2073_v43 = vpack.c.bf16 %v2037_v35, %v2037_v35 }
 0x888   :  { %v2061_v51 = vmax.f32 %v2059_v29, %v2060_v5  ;;  %v2058_v36 = vmax.f32 %v2056_v12, %v2057_v13 }
 0x889   :  { %v2024_v63 = vmax.f32 %v2017_v53, 0.0  ;;  %v2091_v42 = vunpack.c.l.b16 %v2073_v43 }
 0x88a   :  { %v2062_v26 = vrot.slane %v2061_v51, 2  ;;  %v2076_v44 = vpack.c.bf16 %v2058_v36, %v2058_v36 }
 0x88b   :  { %v2030_v28 = vmul.f32 %v2024_v63, %v2990_v58  ;;  %v2097_v61 = vsel %vm545_vm4, %v2092_v46, %v2091_v42  ;;  %vm2163_vm4 = vcmask 259075  }
 0x88c   :  { %v2063_v31 = vmax.f32 %v2061_v51, %v2062_v26  ;;  %v2094_v57 = vunpack.c.l.b16 %v2076_v44  ;;  %v2098_v62 = vsel %vm547_vm5, %v2093_v49, %v2097_v61 }
 0x88d   :  { %v2066_v22 = vsel %vm296_vm3, %v2030_v28, -inf }
 0x88e   :  { %v2064_v30 = vrot.slane %v2063_v31, 1  ;;  %v2067_v33 = vrot.slane %v2066_v22, 4  ;;  %v2099_v1 = vsel %vm549_vm6, %v2094_v57, %v2098_v62 }
 0x890   :  { %v2068_v37 = vmax.f32 %v2066_v22, %v2067_v33  ;;  %v2065_v38 = vmax.f32 %v2063_v31, %v2064_v30 }
 0x892   :  { %v2069_v40 = vrot.slane %v2068_v37, 2  ;;  %v2077_v58 = vpack.c.bf16 %v2065_v38, %v2065_v38 }
 0x894   :  { %v2070_v45 = vmax.f32 %v2068_v37, %v2069_v40  ;;  %v2095_v59 = vunpack.c.l.b16 %v2077_v58 }
 0x896   :  { %v2071_v48 = vrot.slane %v2070_v45, 1  ;;  %v2100_v2 = vsel %vm551_vm7, %v2095_v59, %v2099_v1 }
 0x898   :  { %v2072_v39 = vmax.f32 %v2070_v45, %v2071_v48 }
 0x89a   :  { %v2078_v54 = vpack.c.bf16 %v2072_v39, %v2072_v39 }
 0x89c   :  { %v2096_v7 = vunpack.c.l.b16 %v2078_v54 }
 0x89e   :  { %v2101_v24 = vsel %vm553_vm8, %v2096_v7, %v2100_v2 }
 0x89f   :  { %v2102_v16 = vpack.c.b16 %v2101_v24, %v2101_v24 }
 0x8a1   :  { %2345 = vmatmul.msk.bf16.vlgmr.msrb.gmra.mxu2 %vm296_vm3, %v2102_v16 }
 0x924   :  { %v2121_v6 = vpop.f32.mrf.mxu2 }
 0x925   :  { %v2122_v14 = vadd.f32 %v2438_v4, %v2121_v6 }
 0x927   :  { %v2125_v11 = vmax.f32 %v2122_v14, 0.0 }
 0x929   :  { %v2126_v56 = vpack.c.bf16 %v2125_v11, %v2125_v11 }
 0x92b   :  { %2350 = vmatmul.msk.bf16.vlgmr.msrb.gmra.mxu0 %vm296_vm3, %v2126_v56 }
 0x92c   :  { %v2123_v60 = vpop.f32.mrf.mxu2 }
 0x9a8   :  { %v2151_v15 = vpop.f32.mrf.mxu0 }
 0x9a9   :  { %v2152_v17 = vadd.f32 %v2439_v18, %v2151_v15 }
 0x9ab   :  { %v2160_v20 = vmul.f32 %v2158_v19, %v2152_v17 }
 0x9ad   :  { %2162 = vst.msk [vmem:[%s2874_s27 + $0xa] sm:$0x7] %vm2161_vm2, %v2160_v20 }
 0x9ae   :  { %2164 = vst.msk [vmem:[%s2874_s27 + $0x14] sm:$0x38] %vm2163_vm4, %v2160_v20 }
 0x9b0   :  { %v2153_v0 = vpop.f32.mrf.mxu0 }

</bundles_post_ra>
